<compile_context>
chip_gen: v7x
topology: tpu7x:2x2x1
jax: 0.10.0
libtpu: 0.0.40
codegen_flags: <defaults>
</compile_context>

<pallas_src>
import functools

import jax
import jax.numpy as jnp
from jax import lax
from jax.experimental import pallas as pl
from jax.experimental.pallas import tpu as pltpu

# ---------------------------------------------------------------------------
# Problem sizes (small, synthetic — real module uses atom_fdim=75 -> pad to 128).
# ---------------------------------------------------------------------------
N_ATOMS = 16     # atoms per molecule (multiple of 8)
ATOM_FDIM = 32   # raw atom feature dimension (self.atom_fdim)
DEPTH = 3        # number of message-passing steps (self.depth)
BATCH = 32       # molecules per call
BLOCK_B = 16     # molecules per grid step -> 256 rows per matmul, grid=(2,)


# ---------------------------------------------------------------------------
# Kernel: full message-passing loop + readout for a block of BLOCK_B molecules.
#   adj_ref : [R, R]       bf16 block-diagonal adjacency, R = BLOCK_B * N
#   h_ref   : [R, Fp]      bf16 flat atom features
#   mask_ref: [BLOCK_B, R] bf16 readout block mask (zeroes padded atoms)
#   w_ref   : [2*Fp, Fp]   bf16 stacked [W.T[:F]; W.T[F:]] (lane-padded)
#   b_ref   : [1, Fp]      f32 bias
#   out_ref : [BLOCK_B, Fp] f32 per-molecule readout
# ---------------------------------------------------------------------------
def mp_kernel(adj_ref, h_ref, mask_ref, w_ref, b_ref, out_ref, *, depth):
    def body(_, h):                                  # h: [R, Fp] bf16 carry
        # message_pass: block-diag A @ H  (one lane-dense MXU matmul, f32 acc)
        m = jnp.dot(adj_ref[...], h, preferred_element_type=jnp.float32)
        # update: relu(cat(h, m) @ [W.T[:F]; W.T[F:]] + b) as a single K=2*Fp dot.
        hm = jnp.concatenate([h, m.astype(jnp.bfloat16)], axis=-1)   # [R, 2Fp]
        z = jnp.dot(hm, w_ref[...], preferred_element_type=jnp.float32)
        z = z + b_ref[...]                            # [1,Fp] sublane-broadcast add
        return jnp.maximum(z, 0.0).astype(jnp.bfloat16)

    h = lax.fori_loop(0, depth, body, h_ref[...], unroll=True)

    # readout: per-molecule sum over valid atoms as a block-mask MXU matmul.
    out_ref[...] = jnp.dot(mask_ref[...], h, preferred_element_type=jnp.float32)


def mp_forward(adj, h0, w, b, *, depth=DEPTH, block_b=BLOCK_B):
    """adj: [B,N,N] f32 0/1, h0: [B,N,F] f32, w: [F,2F] (PyTorch Linear), b: [F]."""
    bsz, n, f = h0.shape
    assert bsz % block_b == 0 and n % 8 == 0
    f_pad = max(128, ((f + 127) // 128) * 128)
    r = block_b * n                       # rows per grid step
    n_blocks = bsz // block_b

    # Stacked, transposed, lane-padded weight:
    #   cat(h, m) @ W.T  ==  [h | m] @ [W.T[:F]; W.T[F:]]  (single K = 2*Fp dot).
    wt = jnp.transpose(w)                                            # [2F, F]
    w_stack = jnp.zeros((2 * f_pad, f_pad), jnp.float32)
    w_stack = w_stack.at[:f, :f].set(wt[:f])
    w_stack = w_stack.at[f_pad:f_pad + f, :f].set(wt[f:])
    b_pad = jnp.zeros((1, f_pad), jnp.float32).at[0, :f].set(b)

    # Flat, lane-padded atom features (bf16 — every in-kernel consumer is bf16).
    h0_pad = jnp.zeros((bsz, n, f_pad), jnp.float32).at[:, :, :f].set(h0)
    h0_flat = h0_pad.reshape(bsz * n, f_pad).astype(jnp.bfloat16)

    # Block-diagonal adjacency per grid step: adj_bd[g, b*n+i, c*n+j] =
    # adj[g*block_b+b, i, j] if b == c else 0.
    adj_r = adj.reshape(n_blocks, block_b, n, n)
    eye_b = jnp.eye(block_b, dtype=adj.dtype)
    adj_bd = jnp.einsum('gbij,bc->gbicj', adj_r, eye_b).reshape(n_blocks, r, r)
    adj_bd = adj_bd.reshape(n_blocks * r, r).astype(jnp.bfloat16)    # 0/1 exact

    # Readout block mask: ones at each molecule's atom columns (generalizes to
    # atom-padded molecules by zeroing padded-atom columns).
    mask = jnp.kron(jnp.eye(block_b, dtype=jnp.float32),
                    jnp.ones((1, n), jnp.float32)).astype(jnp.bfloat16)  # [Bb, R]

    out = pl.pallas_call(
        functools.partial(mp_kernel, depth=depth),
        out_shape=jax.ShapeDtypeStruct((bsz, f_pad), jnp.float32),
        grid=(n_blocks,),
        in_specs=[
            pl.BlockSpec((r, r), lambda i: (i, 0)),                  # block-diag adj
            pl.BlockSpec((r, f_pad), lambda i: (i, 0)),              # flat atom feats
            pl.BlockSpec((block_b, r), lambda i: (0, 0)),            # readout mask
            pl.BlockSpec((2 * f_pad, f_pad), lambda i: (0, 0)),      # stacked W.T
            pl.BlockSpec((1, f_pad), lambda i: (0, 0)),              # bias
        ],
        out_specs=pl.BlockSpec((block_b, f_pad), lambda i: (i, 0)),
        compiler_params=pltpu.CompilerParams(
            dimension_semantics=("parallel",)),                      # 2 TCs on v7x
    )(adj_bd, h0_flat, mask, w_stack.astype(jnp.bfloat16), b_pad)

    return out[:, :f]                                                # [B, F]


# ---------------------------------------------------------------------------
# Pure-JAX (f32) reference for sanity checking.
# ---------------------------------------------------------------------------
def mp_reference(adj, h0, w, b, *, depth=DEPTH):
    def one(adj_i, h_i):
        h = h_i
        for _ in range(depth):
            m = adj_i @ h
            h = jax.nn.relu(jnp.concatenate([h, m], axis=-1) @ w.T + b)
        return jnp.sum(h, axis=0)
    return jax.vmap(one)(adj, h0)


if __name__ == "__main__":
    key = jax.random.PRNGKey(0)
    k_adj, k_h, k_w, k_b = jax.random.split(key, 4)

    # Synthetic symmetric adjacency (undirected bonds), no self loops.
    raw = jax.random.uniform(k_adj, (BATCH, N_ATOMS, N_ATOMS))
    adj = (raw + jnp.swapaxes(raw, 1, 2) > 1.2).astype(jnp.float32)
    adj = adj * (1.0 - jnp.eye(N_ATOMS, dtype=jnp.float32))

    # Synthetic atom features.
    h0 = jax.random.normal(k_h, (BATCH, N_ATOMS, ATOM_FDIM), dtype=jnp.float32)

    # Deterministic init of U = nn.Linear(2*atom_fdim, atom_fdim).
    fan_in = 2 * ATOM_FDIM
    bound = 1.0 / (fan_in ** 0.5)
    w = jax.random.uniform(
        k_w, (ATOM_FDIM, 2 * ATOM_FDIM), minval=-bound, maxval=bound,
        dtype=jnp.float32)
    b = jax.random.uniform(
        k_b, (ATOM_FDIM,), minval=-bound, maxval=bound, dtype=jnp.float32)

    out = jax.block_until_ready(mp_forward(adj, h0, w, b))
    ref = mp_reference(adj, h0, w, b)

    assert out.shape == (BATCH, ATOM_FDIM)
    # bf16 MXU inputs + f32 accumulation: compare with a max-normalized error.
    rel_err = float(jnp.max(jnp.abs(out - ref)) / (jnp.max(jnp.abs(ref)) + 1e-6))
    assert rel_err < 3e-2, f"relative error too large: {rel_err}"

    print("KERNEL_OK")
</pallas_src>

<mosaic_0001>
module attributes {stable_mosaic.version = 11 : i64} {
  func.func @mp_kernel(%arg0: i32, %arg1: memref<256x256xbf16, #tpu.memory_space<vmem>>, %arg2: memref<256x128xbf16, #tpu.memory_space<vmem>>, %arg3: memref<16x256xbf16, #tpu.memory_space<vmem>>, %arg4: memref<256x128xbf16, #tpu.memory_space<vmem>>, %arg5: memref<1x128xf32, #tpu.memory_space<vmem>>, %arg6: memref<16x128xf32, #tpu.memory_space<vmem>>) attributes {dimension_semantics = [#tpu.dimension_semantics<parallel>], iteration_bounds = array<i64: 2>, scalar_prefetch = 0 : i64, scratch_operands = 0 : i64, tpu.core_type = #tpu.core_type<tc>, window_params = [{transform_indices = @transform_0, window_bounds = array<i64: 256, 256>}, {transform_indices = @transform_1, window_bounds = array<i64: 256, 128>}, {pipeline_mode = #tpu.pipeline_mode<synchronous>, transform_indices = @transform_2, window_bounds = array<i64: 16, 256>}, {pipeline_mode = #tpu.pipeline_mode<synchronous>, transform_indices = @transform_3, window_bounds = array<i64: 256, 128>}, {pipeline_mode = #tpu.pipeline_mode<synchronous>, transform_indices = @transform_4, window_bounds = array<i64: 1, 128>}, {transform_indices = @transform_5, window_bounds = array<i64: 16, 128>}]} {
    %c0 = arith.constant 0 : index
    %c0_0 = arith.constant 0 : index
    %0 = vector.load %arg2[%c0, %c0_0] : memref<256x128xbf16, #tpu.memory_space<vmem>>, vector<256x128xbf16>
    %c0_i32 = arith.constant 0 : i32
    %c0_1 = arith.constant 0 : index
    %c0_2 = arith.constant 0 : index
    %1 = vector.load %arg1[%c0_1, %c0_2] : memref<256x256xbf16, #tpu.memory_space<vmem>>, vector<256x256xbf16>
    %cst = arith.constant dense<0.000000e+00> : vector<256x128xf32>
    %2 = tpu.matmul %1, %0, %cst {dimension_numbers = #tpu.dot_dimension_numbers<[1], [0], [0], [1], [0, 0, 1, 1], [], []>} : vector<256x256xbf16>, vector<256x128xbf16>, vector<256x128xf32> -> vector<256x128xf32>
    %3 = arith.truncf %2 : vector<256x128xf32> to vector<256x128xbf16>
    %4 = tpu.concatenate %0, %3 in 1 : vector<256x128xbf16>, vector<256x128xbf16> -> vector<256x256xbf16>
    %c0_3 = arith.constant 0 : index
    %c0_4 = arith.constant 0 : index
    %5 = vector.load %arg4[%c0_3, %c0_4] : memref<256x128xbf16, #tpu.memory_space<vmem>>, vector<256x128xbf16>
    %cst_5 = arith.constant dense<0.000000e+00> : vector<256x128xf32>
    %6 = tpu.matmul %4, %5, %cst_5 {dimension_numbers = #tpu.dot_dimension_numbers<[1], [0], [0], [1], [0, 0, 1, 1], [], []>} : vector<256x256xbf16>, vector<256x128xbf16>, vector<256x128xf32> -> vector<256x128xf32>
    %c0_6 = arith.constant 0 : index
    %c0_7 = arith.constant 0 : index
    %7 = vector.load %arg5[%c0_6, %c0_7] : memref<1x128xf32, #tpu.memory_space<vmem>>, vector<1x128xf32>
    %8 = vector.broadcast %7 : vector<1x128xf32> to vector<256x128xf32>
    %9 = arith.addf %6, %8 : vector<256x128xf32>
    %cst_8 = arith.constant 0.000000e+00 : f32
    %10 = vector.broadcast %cst_8 : f32 to vector<256x128xf32>
    %11 = arith.maximumf %9, %10 : vector<256x128xf32>
    %12 = arith.truncf %11 : vector<256x128xf32> to vector<256x128xbf16>
    %c1_i32 = arith.constant 1 : i32
    %c0_9 = arith.constant 0 : index
    %c0_10 = arith.constant 0 : index
    %13 = vector.load %arg1[%c0_9, %c0_10] : memref<256x256xbf16, #tpu.memory_space<vmem>>, vector<256x256xbf16>
    %cst_11 = arith.constant dense<0.000000e+00> : vector<256x128xf32>
    %14 = tpu.matmul %13, %12, %cst_11 {dimension_numbers = #tpu.dot_dimension_numbers<[1], [0], [0], [1], [0, 0, 1, 1], [], []>} : vector<256x256xbf16>, vector<256x128xbf16>, vector<256x128xf32> -> vector<256x128xf32>
    %15 = arith.truncf %14 : vector<256x128xf32> to vector<256x128xbf16>
    %16 = tpu.concatenate %12, %15 in 1 : vector<256x128xbf16>, vector<256x128xbf16> -> vector<256x256xbf16>
    %c0_12 = arith.constant 0 : index
    %c0_13 = arith.constant 0 : index
    %17 = vector.load %arg4[%c0_12, %c0_13] : memref<256x128xbf16, #tpu.memory_space<vmem>>, vector<256x128xbf16>
    %cst_14 = arith.constant dense<0.000000e+00> : vector<256x128xf32>
    %18 = tpu.matmul %16, %17, %cst_14 {dimension_numbers = #tpu.dot_dimension_numbers<[1], [0], [0], [1], [0, 0, 1, 1], [], []>} : vector<256x256xbf16>, vector<256x128xbf16>, vector<256x128xf32> -> vector<256x128xf32>
    %c0_15 = arith.constant 0 : index
    %c0_16 = arith.constant 0 : index
    %19 = vector.load %arg5[%c0_15, %c0_16] : memref<1x128xf32, #tpu.memory_space<vmem>>, vector<1x128xf32>
    %20 = vector.broadcast %19 : vector<1x128xf32> to vector<256x128xf32>
    %21 = arith.addf %18, %20 : vector<256x128xf32>
    %cst_17 = arith.constant 0.000000e+00 : f32
    %22 = vector.broadcast %cst_17 : f32 to vector<256x128xf32>
    %23 = arith.maximumf %21, %22 : vector<256x128xf32>
    %24 = arith.truncf %23 : vector<256x128xf32> to vector<256x128xbf16>
    %c2_i32 = arith.constant 2 : i32
    %c0_18 = arith.constant 0 : index
    %c0_19 = arith.constant 0 : index
    %25 = vector.load %arg1[%c0_18, %c0_19] : memref<256x256xbf16, #tpu.memory_space<vmem>>, vector<256x256xbf16>
    %cst_20 = arith.constant dense<0.000000e+00> : vector<256x128xf32>
    %26 = tpu.matmul %25, %24, %cst_20 {dimension_numbers = #tpu.dot_dimension_numbers<[1], [0], [0], [1], [0, 0, 1, 1], [], []>} : vector<256x256xbf16>, vector<256x128xbf16>, vector<256x128xf32> -> vector<256x128xf32>
    %27 = arith.truncf %26 : vector<256x128xf32> to vector<256x128xbf16>
    %28 = tpu.concatenate %24, %27 in 1 : vector<256x128xbf16>, vector<256x128xbf16> -> vector<256x256xbf16>
    %c0_21 = arith.constant 0 : index
    %c0_22 = arith.constant 0 : index
    %29 = vector.load %arg4[%c0_21, %c0_22] : memref<256x128xbf16, #tpu.memory_space<vmem>>, vector<256x128xbf16>
    %cst_23 = arith.constant dense<0.000000e+00> : vector<256x128xf32>
    %30 = tpu.matmul %28, %29, %cst_23 {dimension_numbers = #tpu.dot_dimension_numbers<[1], [0], [0], [1], [0, 0, 1, 1], [], []>} : vector<256x256xbf16>, vector<256x128xbf16>, vector<256x128xf32> -> vector<256x128xf32>
    %c0_24 = arith.constant 0 : index
    %c0_25 = arith.constant 0 : index
    %31 = vector.load %arg5[%c0_24, %c0_25] : memref<1x128xf32, #tpu.memory_space<vmem>>, vector<1x128xf32>
    %32 = vector.broadcast %31 : vector<1x128xf32> to vector<256x128xf32>
    %33 = arith.addf %30, %32 : vector<256x128xf32>
    %cst_26 = arith.constant 0.000000e+00 : f32
    %34 = vector.broadcast %cst_26 : f32 to vector<256x128xf32>
    %35 = arith.maximumf %33, %34 : vector<256x128xf32>
    %36 = arith.truncf %35 : vector<256x128xf32> to vector<256x128xbf16>
    %c0_27 = arith.constant 0 : index
    %c0_28 = arith.constant 0 : index
    %37 = vector.load %arg3[%c0_27, %c0_28] : memref<16x256xbf16, #tpu.memory_space<vmem>>, vector<16x256xbf16>
    %cst_29 = arith.constant dense<0.000000e+00> : vector<16x128xf32>
    %38 = tpu.matmul %37, %36, %cst_29 {dimension_numbers = #tpu.dot_dimension_numbers<[1], [0], [0], [1], [0, 0, 1, 1], [], []>} : vector<16x256xbf16>, vector<256x128xbf16>, vector<16x128xf32> -> vector<16x128xf32>
    %c0_30 = arith.constant 0 : index
    %c0_31 = arith.constant 0 : index
    %39 = vector.load %arg6[%c0_30, %c0_31] : memref<16x128xf32, #tpu.memory_space<vmem>>, vector<16x128xf32>
    tpu.vector_store %arg6[%c0_30, %c0_31], %38 {strides = array<i32>} : memref<16x128xf32, #tpu.memory_space<vmem>>, vector<16x128xf32>,
    return
  }
  func.func @transform_0(%arg0: i32) -> (i32, i32) {
    %c0_i32 = arith.constant 0 : i32
    %c0_i32_0 = arith.constant 0 : i32
    return %arg0, %c0_i32 : i32, i32
  }
  func.func @transform_1(%arg0: i32) -> (i32, i32) {
    %c0_i32 = arith.constant 0 : i32
    %c0_i32_0 = arith.constant 0 : i32
    return %arg0, %c0_i32 : i32, i32
  }
  func.func @transform_2(%arg0: i32) -> (i32, i32) {
    %c0_i32 = arith.constant 0 : i32
    %c0_i32_0 = arith.constant 0 : i32
    %c0_i32_1 = arith.constant 0 : i32
    return %c0_i32, %c0_i32_0 : i32, i32
  }
  func.func @transform_3(%arg0: i32) -> (i32, i32) {
    %c0_i32 = arith.constant 0 : i32
    %c0_i32_0 = arith.constant 0 : i32
    %c0_i32_1 = arith.constant 0 : i32
    return %c0_i32, %c0_i32_0 : i32, i32
  }
  func.func @transform_4(%arg0: i32) -> (i32, i32) {
    %c0_i32 = arith.constant 0 : i32
    %c0_i32_0 = arith.constant 0 : i32
    %c0_i32_1 = arith.constant 0 : i32
    return %c0_i32, %c0_i32_0 : i32, i32
  }
  func.func @transform_5(%arg0: i32) -> (i32, i32) {
    %c0_i32 = arith.constant 0 : i32
    %c0_i32_0 = arith.constant 0 : i32
    return %arg0, %c0_i32 : i32, i32
  }
}

</mosaic_0001>

<bundles_post_ra>
// kernel: tpu_custom_call.1
= control target key start
LH: loop header
LB: loop body
LE: loop exit
PB: predicated region body
PF: predicated region fallthrough
CT: control target
= control target key end

     0   :  { %s4247_s0 = inlined_call_operand.hbm [shape: bf16[512,256], index: 0, kind: input, shape index: {}]   ;;  %s4248_s1 = inlined_call_operand.hbm [shape: bf16[512,128], index: 1, kind: input, shape index: {}]   ;;  %s4249_s2 = inlined_call_operand.hbm [shape: bf16[16,256], index: 2, kind: input, shape index: {}]   ;;  %s4250_s3 = inlined_call_operand.hbm [shape: bf16[256,128], index: 3, kind: input, shape index: {}]   ;;  %s4251_s4 = inlined_call_operand.vmem [shape: f32[1,128], index: 4, kind: input, shape index: {}]   ;;  %s4252_s5 = inlined_call_operand.hbm [shape: f32[32,128], index: 5, kind: output, shape index: {}]  }
   0x1   :  { %4272 = sst [smem:[#allocation29_spill]] %s4247_s0 }
   0x2   :  { %4273 = sst [smem:[#allocation30_spill]] %s4249_s2 }
   0x3   :  { %4274 = sst [smem:[#allocation31_spill]] %s4250_s3 }
   0x4   :  { %10 = vsyncpa [#allocation3], 0 }
   0x5   :  { %12 = vsyncpa [#allocation3 + $0x1], 0 }
   0x6   :  { %13 = vsyncpa [#allocation6], 0 }
   0x7   :  { %15 = vsyncpa [#allocation6 + $0x1], 0 }
   0x8   :  { %16 = vsyncpa [#allocation9], 0 }
   0x9   :  { %17 = vsyncpa [#allocation4], 0 }
   0xa   :  { %19 = vsyncpa [#allocation4 + $0x1], 0  ;;  %s3336_s18 = smov 0   ;;  %s3338_s19 = smov 0  }
   0xb   :  { %s3340_s20 = smov 0   ;;  %s3342_s21 = smov 0  }
   0xc LB: > { %s3357_s22 = sadd.s32 4294967295, %s3293_s21   ;;  %s2114_s23 = sadd.s32 4294967294, %s3293_s21   ;;  %s3293_s21 = sphi %s3342_s21, %s4326_s21   ;;  %s3289_s20 = sphi %s3340_s20, %s4325_s20   ;;  %s3285_s19 = sphi %s3338_s19, %s4324_s19   ;;  %s3281_s18 = sphi %s3336_s18, %s4323_s18  }
   0xd   : > { %p45_p0 = scmp.ne.s32.totalorder %s3285_s19, %s3281_s18  ;;  %p4253_p1 = scmp.eq.s32.totalorder %s3357_s22, 0 }
   0xe   : > { %p164_p3 = scmp.eq.s32.totalorder %s2114_s23, 1  ;;  %p2115_p5 = scmp.ge.s32.totalorder %s3293_s21, 1 }
   0xf   : > { %p3366_p4 = por %p4253_p1, %p45_p0  ;;  %p171_p7 = scmp.lt.s32.totalorder %s3293_s21, 3 }
  0x10   : > { %p3371_p6 = por %p164_p3, %p45_p0  ;;  %s3295_s27 = smov [#allocation7]  }
  0x11   : > { %s4275_s24 = scalar_select %p3366_p4, 1, 0 }
  0x12   : > { %s4276_s25 = scalar_select %p3371_p6, 1, 0 }
  0x13   : > { %p3376_p8 = pnand %p2115_p5, %p171_p7  ;;  %s183_s28 = sshll.u32 %s3295_s27, 4  ;;  %s3380_s28 = int_to_ptr.vmem [resolvable:$true] %s183_s28 }
  0x14   : > { %s3296_s30 = smov [#allocation8]   ;;  %s4279_s2 = sld [smem:[#allocation30_spill]] }
  0x15   : > { %p2916_p9 = pneg %p3376_p8  ;;  %s196_s6 = sshll.u32 %s3296_s30, 4  ;;  %s3391_s6 = int_to_ptr.vmem [resolvable:$true] %s196_s6 }
  0x17   : > { %p3387_p11 = pnand %p2916_p9, %p4253_p1 }
  0x19   : > { %p3101_p13 = pneg %p3387_p11 }
  0x1a   : > { %s3099_s9 = scalar_lea.hbm %s4279_s2, 256 }
  0x1b   : > { %p3100_p12 = scmp.ne.s32.totalorder %s4279_s2, %s3099_s9  ;;  %p3106_p5 = scmp.lt.u32.totalorder %s3099_s9, %s4279_s2 }
  0x1d   : > { %p3102_p0 = pnand %p3101_p13, %p3100_p12 }
  0x1f   : > { %p3103_p3 = pneg %p3102_p0 }
  0x21   : > { %p3108_p7 = pnand %p3106_p5, %p3103_p3 }
  0x23   : > { %3111 = shalt.err (!%p3108_p7)
}
  0x24   : > { %s3112_s14 = scalar_lea.vmem %s3380_s28, 256  ;;  %p3120_p2 = scmp.lt.s32.totalorder %s3380_s28, %s3380_s28 }
  0x25   : > { %p3113_p9 = scmp.ne.s32.totalorder %s3380_s28, %s3112_s14  ;;  %p3121_p12 = scmp.lt.s32.totalorder %s3112_s14, %s3112_s14 }
  0x27   : > { %p3115_p10 = pnand %p3113_p9, %p3101_p13  ;;  %p3122_p0 = por %p3121_p12, %p3120_p2 }
  0x29   : > { %p3116_p1 = pneg %p3115_p10 }
  0x2b   : > { %p3123_p6 = pnand %p3122_p0, %p3116_p1 }
  0x2d   : > { %3126 = shalt.err (!%p3123_p6)
}
  0x2e   : > { %s4256_s15 = smov 128   ;;  %s3298_s16 = smov 8  }
  0x2f   : > { %2919 = dma.hbm_to_vmem [thread:$0]  (!%p3387_p11), %s4279_s2, 256, %s3380_s28, [#allocation6], %s4256_s15, %s4256_s15, %s3298_s16  }
  0x30   : > { %s4280_s3 = sld [smem:[#allocation31_spill]] }
  0x36   : > { %s3127_s7 = scalar_lea.hbm %s4280_s3, 2048 }
  0x37   : > { %p3128_p1 = scmp.ne.s32.totalorder %s4280_s3, %s3127_s7  ;;  %p3134_p10 = scmp.lt.u32.totalorder %s3127_s7, %s4280_s3 }
  0x39   : > { %p3130_p2 = pnand %p3128_p1, %p3101_p13 }
  0x3b   : > { %p3131_p6 = pneg %p3130_p2 }
  0x3d   : > { %p3136_p3 = pnand %p3134_p10, %p3131_p6 }
  0x3f   : > { %3139 = shalt.err (!%p3136_p3)
}
  0x40   : > { %s3140_s28 = scalar_lea.vmem %s3391_s6, 2048  ;;  %p3148_p12 = scmp.lt.s32.totalorder %s3391_s6, %s3391_s6 }
  0x41   : > { %p3141_p5 = scmp.ne.s32.totalorder %s3391_s6, %s3140_s28  ;;  %p3149_p0 = scmp.lt.s32.totalorder %s3140_s28, %s3140_s28 }
  0x43   : > { %p3143_p7 = pnand %p3141_p5, %p3101_p13  ;;  %p3150_p1 = por %p3149_p0, %p3148_p12 }
  0x45   : > { %p3144_p9 = pneg %p3143_p7 }
  0x47   : > { %p3151_p2 = pnand %p3150_p1, %p3144_p9 }
  0x49   : > { %3154 = shalt.err (!%p3151_p2)
}
  0x4a   : > { %s4254_s12 = smov 64   ;;  %s4255_s13 = smov 4  }
  0x4b   : > { %2922 = dma.hbm_to_vmem [thread:$0]  (!%p3387_p11), %s4280_s3, 2048, %s3391_s6, [#allocation9], %s4254_s12, %s4254_s12, %s4255_s13  }
  0x4c   : > { %s3452_s23 = sadd.s32 1, %s3293_s21   ;;  %s32_s30 = sadd.s32 1, %s3289_s20 }
  0x4d   : > { %s29_s27 = ssub.s32 %s3293_s21, %s3452_s23  ;;  %p39_p6 = scmp.ne.s32.totalorder %s3289_s20, %s3285_s19 }
  0x4e   : > { %p30_p13 = scmp.eq.s32.totalorder %s29_s27, 0  ;;  %p40_p10 = scmp.eq.s32.totalorder %s3293_s21, 0 }
  0x4f   : > { %p4281_p5 = scmp.eq.s32.totalorder %s3357_s22, 1  ;;  %p2936_p9 = scmp.lt.s32.totalorder %s3293_s21, 2 }
  0x50   : > { %s3461_s7 = scalar_select %p30_p13, %s3289_s20, %s32_s30  }
  0x51   : > { %p41_p3 = por %p40_p10, %p39_p6  ;;  %p3465_p7 = por %p4281_p5, %p39_p6 }
  0x52   : > { %s3471_s8 = sand.u32 1, %s3289_s20   ;;  %s2205_s9 = sshll.u32 %s3293_s21, 12 }
  0x53   : > { %s4282_s29 = scalar_select %p3465_p7, 1, 0 }
  0x54   : > { %s2119_s6 = sshll.u32 %s3471_s8, 8  ;;  %s4283_s0 = sld [smem:[#allocation29_spill]] }
  0x55   : > { %s217_s14 = scalar_lea.vmem [#allocation2], %s2119_s6  ;;  %p3482_p11 = pnand %p2936_p9, %p41_p3 }
  0x56   : > { %s225_s17 = sshll.u32 %s217_s14, 4  ;;  %s2123_s12 = sshll.u32 %s3471_s8, 7  ;;  %s3480_s17 = int_to_ptr.vmem [resolvable:$true] %s225_s17 }
  0x57   : > { %s214_s13 = scalar_lea.sflag [#allocation3], %s3471_s8  ;;  %p3157_p0 = pneg %p3482_p11 }
  0x5a   : > { %s3478_s28 = scalar_lea.hbm %s4283_s0, %s2205_s9  ;;  %s3160_s11 = scalar_lea.hbm %s4283_s0, 8192 }
  0x5b   : > { %s3155_s10 = scalar_lea.hbm %s3478_s28, 4096  ;;  %p3161_p13 = scmp.lt.u32.totalorder %s3478_s28, %s4283_s0 }
  0x5c   : > { %p3156_p12 = scmp.ne.s32.totalorder %s3478_s28, %s3155_s10  ;;  %p3162_p6 = scmp.lt.u32.totalorder %s3160_s11, %s3155_s10 }
  0x5d   : > { %p3164_p3 = scmp.lt.u32.totalorder %s3155_s10, %s3478_s28 }
  0x5e   : > { %p3158_p1 = pnand %p3157_p0, %p3156_p12  ;;  %p3163_p10 = por %p3162_p6, %p3161_p13 }
  0x60   : > { %p3159_p2 = pneg %p3158_p1  ;;  %p3165_p5 = por %p3164_p3, %p3163_p10 }
  0x62   : > { %p3166_p9 = pnand %p3165_p5, %p3159_p2 }
  0x64   : > { %3169 = shalt.err (!%p3166_p9)
}
  0x65   : > { %s3170_s30 = scalar_lea.vmem %s3480_s17, 4096  ;;  %s3301_s6 = smov [#allocation2]  }
  0x66   : > { %p3171_p12 = scmp.ne.s32.totalorder %s3480_s17, %s3170_s30  ;;  %s3175_s9 = sshll.u32 %s3301_s6, 4  ;;  %s3176_s9 = int_to_ptr.vmem [resolvable:$false] %s3175_s9 }
  0x67   : > { %s3177_s15 = scalar_lea.vmem %s3176_s9, 8192  ;;  %p3178_p4 = scmp.lt.s32.totalorder %s3480_s17, %s3176_s9 }
  0x68   : > { %p3173_p1 = pnand %p3171_p12, %p3157_p0  ;;  %p3179_p13 = scmp.lt.s32.totalorder %s3177_s15, %s3170_s30 }
  0x6a   : > { %p3174_p7 = pneg %p3173_p1  ;;  %p3180_p6 = por %p3179_p13, %p3178_p4 }
  0x6c   : > { %p3181_p10 = pnand %p3180_p6, %p3174_p7 }
  0x6e   : > { %3184 = shalt.err (!%p3181_p10)
}
  0x6f   : > { %s4285_s10 = smov 128   ;;  %s2206_s11 = sshll.u32 %s3293_s21, 11 }
  0x70   : > { %2926 = dma.hbm_to_vmem [thread:$0]  (!%p3482_p11), %s3478_s28, 4096, %s3480_s17, %s214_s13, %s4285_s10, %s4285_s10, %s3298_s16  }
  0x71   : > { %s3523_s6 = scalar_lea.hbm %s4248_s1, %s2206_s11  ;;  %s239_s9 = scalar_lea.vmem [#allocation5], %s2123_s12 }
  0x72   : > { %s246_s15 = sshll.u32 %s239_s9, 4  ;;  %s4286_s0 = sand.u32 1, %s3293_s21   ;;  %s3527_s15 = int_to_ptr.vmem [resolvable:$true] %s246_s15 }
  0x73   : > { %s3531_s2 = scalar_lea.sflag [#allocation6], %s4286_s0  ;;  %s3185_s3 = scalar_lea.hbm %s3523_s6, 2048 }
  0x74   : > { %p3186_p4 = scmp.ne.s32.totalorder %s3523_s6, %s3185_s3  ;;  %s3190_s8 = scalar_lea.hbm %s4248_s1, 4096 }
  0x75   : > { %p3191_p3 = scmp.lt.u32.totalorder %s3523_s6, %s4248_s1  ;;  %p3192_p5 = scmp.lt.u32.totalorder %s3190_s8, %s3185_s3 }
  0x76   : > { %p3188_p7 = pnand %p3186_p4, %p3157_p0  ;;  %p3194_p12 = scmp.lt.u32.totalorder %s3185_s3, %s3523_s6 }
  0x77   : > { %p3193_p9 = por %p3192_p5, %p3191_p3 }
  0x78   : > { %p3189_p2 = pneg %p3188_p7 }
  0x79   : > { %p3195_p1 = por %p3194_p12, %p3193_p9 }
  0x7b   : > { %p3196_p13 = pnand %p3195_p1, %p3189_p2 }
  0x7d   : > { %3199 = shalt.err (!%p3196_p13)
}
  0x7e   : > { %s3200_s0 = scalar_lea.vmem %s3527_s15, 2048  ;;  %s3302_s12 = smov [#allocation5]  }
  0x7f   : > { %p3201_p6 = scmp.ne.s32.totalorder %s3527_s15, %s3200_s0  ;;  %s3205_s10 = sshll.u32 %s3302_s12, 4  ;;  %s3206_s10 = int_to_ptr.vmem [resolvable:$false] %s3205_s10 }
  0x80   : > { %s3207_s11 = scalar_lea.vmem %s3206_s10, 4096  ;;  %p3208_p7 = scmp.lt.s32.totalorder %s3527_s15, %s3206_s10 }
  0x81   : > { %p3203_p10 = pnand %p3201_p6, %p3157_p0  ;;  %p3209_p3 = scmp.lt.s32.totalorder %s3207_s11, %s3200_s0 }
  0x83   : > { %p3204_p4 = pneg %p3203_p10  ;;  %p3210_p5 = por %p3209_p3, %p3208_p7 }
  0x85   : > { %p3211_p9 = pnand %p3210_p5, %p3204_p4 }
  0x87   : > { %3214 = shalt.err (!%p3211_p9)
}
  0x88   : > { %s4287_s3 = smov 4   ;;  %s4288_s14 = smov 64  }
  0x89   : > { %2929 = dma.hbm_to_vmem [thread:$0]  (!%p3482_p11), %s3523_s6, 2048, %s3527_s15, %s3531_s2, %s4288_s14, %s4288_s14, %s4287_s3  }
  0x8a   : > { %258 = sbr.rel (%p3376_p8) target bundleno = 2124 (0x84c), region = 40 }
  0x91   : > { %s3563_s30 = sand.u32 1, %s3285_s19   ;;  %p4289_p0 = scmp.ne.s32.totalorder %s4275_s24, 0 }
  0x92   : > { %s2127_s9 = sshll.u32 %s3563_s30, 8  ;;  %s261_s16 = scalar_lea.sflag [#allocation3], %s3563_s30 }
  0x93   : > { %s3567_s13 = scalar_lea.vmem [#allocation2], %s2127_s9 }
  0x94   : > { %3260 = dma.done.wait (%p4289_p0), %s261_s16, 4096  }
  0x95   : > { %3262 = vsyncadd (%p4289_p0), %s261_s16, 4294963200  ;;  %s269_s2 = sand.u32 1, %s3357_s22   ;;  %s2128_s26 = sshll.u32 %s3563_s30, 7 }
  0x96   : > { %s270_s27 = scalar_lea.sflag [#allocation6], %s269_s2  ;;  %s3575_s6 = scalar_lea.vmem [#allocation5], %s2128_s26 }
  0x97   : > { %3264 = dma.done.wait (%p4289_p0), %s270_s27, 2048  }
  0x98   : > { %3266 = vsyncadd (%p4289_p0), %s270_s27, 4294965248  ;;  %p4290_p8 = scmp.eq.s32.totalorder %s3357_s22, 0 }
  0x9a   : > { %3268 = dma.done.wait (%p4290_p8), [#allocation6], 256   ;;  %p4291_p11 = pmov %p4290_p8 }
  0x9b   : > { %p4292_p2 = pmov %p4290_p8 }
  0x9c   : > { %3270 = vsyncadd (%p4291_p11), [#allocation6], 4294967040 }
  0x9d   : > { %3272 = dma.done.wait (%p4292_p2), [#allocation9], 2048   ;;  %p4293_p12 = pmov %p4292_p2 }
  0x9e   : > { %v3590_v0 = vld [vmem:[%s3575_s6 + $0x40] sm:$0xff]   ;;  %v3597_v2 = vld [vmem:[%s3575_s6 + $0x48] sm:$0xff]   ;;  %v3605_v4 = vld [vmem:[%s3575_s6 + $0x50] sm:$0xff]   ;;  %s2131_s17 = sshll.u32 %s3563_s30, 4  ;;  %s2207_s10 = sshll.u32 %s3357_s22, 8 }
  0x9f   : > { %3274 = vsyncadd (%p4293_p12), [#allocation9], 4294965248  ;;  %v3593_v1 = vld [vmem:[%s3575_s6] sm:$0xff]   ;;  %2208 = vmatprep.subr.bf16.mxu0 %v3590_v0  ;;  %v3601_v3 = vld [vmem:[%s3575_s6 + $0x8] sm:$0xff]   ;;  %s312_s0 = scalar_lea.vmem [#allocation10], %s2131_s17  ;;  %s4203_s14 = scalar_lea.hbm %s4252_s5, %s2207_s10 }
  0xa0   : > { %2209 = vmatpush3.bf16.msra.mxu0 %v3593_v1  ;;  %v3609_v5 = vld [vmem:[%s3575_s6 + $0x10] sm:$0xff]   ;;  %v3613_v6 = vld [vmem:[%s3575_s6 + $0x58] sm:$0xff]   ;;  %v3621_v8 = vld [vmem:[%s3575_s6 + $0x60] sm:$0xff]   ;;  %s1999_s12 = sshll.u32 %s312_s0, 4  ;;  %s1986_s9 = scalar_lea.sflag [#allocation4], %s3563_s30  ;;  %s4198_s12 = int_to_ptr.vmem [resolvable:$true] %s1999_s12 }
  0xa1   : > { %2210 = vmatprep.subr.bf16.mxu0 %v3597_v2  ;;  %v3617_v7 = vld [vmem:[%s3575_s6 + $0x18] sm:$0xff]   ;;  %v3624_v9 = vld [vmem:[%s3575_s6 + $0x20] sm:$0xff]   ;;  %v3628_v10 = vld [vmem:[%s3575_s6 + $0x68] sm:$0xff]   ;;  %s3215_s16 = scalar_lea.vmem %s4198_s12, 256  ;;  %p4320_p13 = scmp.ne.s32.totalorder %s4282_s29, 0 }
  0xa2   : > { %v3632_v11 = vld [vmem:[%s3567_s13 + $0x4] ss:$8 sps:$4 sm:$0xff]   ;;  %v3641_v13 = vld [vmem:[%s3575_s6 + $0x70] sm:$0xff]   ;;  %v3649_v15 = vld [vmem:[%s3575_s6 + $0x78] sm:$0xff]   ;;  %p3216_p1 = scmp.ne.s32.totalorder %s4198_s12, %s3215_s16  ;;  %s3303_s22 = smov [#allocation10]  }
  0xa3   : > { %669 = vmatprep.mubr.bf16.mxu0 %v3632_v11  ;;  %v3637_v12 = vld [vmem:[%s3575_s6 + $0x28] sm:$0xff]   ;;  %v3645_v14 = vld [vmem:[%s3575_s6 + $0x30] sm:$0xff]   ;;  %v3653_v16 = vld [vmem:[%s3575_s6 + $0x38] sm:$0xff]  }
  0xa4   : > { %2211 = vmatpush3.bf16.msra.mxu0 %v3601_v3  ;;  %v3657_v17 = vld [vmem:[%s3567_s13] ss:$8 sps:$4 sm:$0xff]   ;;  %v3661_v18 = vld [vmem:[%s3567_s13 + $0x14] ss:$8 sps:$4 sm:$0xff]   ;;  %v3666_v19 = vld [vmem:[%s3567_s13 + $0x10] ss:$8 sps:$4 sm:$0xff]   ;;  %p3217_p6 = pnand %p3216_p1, %p4320_p13 }
  0xa5   : > { %2212 = vmatprep.subr.bf16.mxu0 %v3605_v4  ;;  %v3669_v20 = vld [vmem:[%s3567_s13 + $0x24] ss:$8 sps:$4 sm:$0xff]   ;;  %v3671_v21 = vld [vmem:[#allocation8 + $0x40] sm:$0xff]   ;;  %v3676_v23 = vld [vmem:[#allocation8 + $0x48] sm:$0xff]  }
  0xa6   : > { %v3673_v22 = vld [vmem:[#allocation8] sm:$0xff]   ;;  %2320 = vmatprep.subr.bf16.mxu1 %v3671_v21  ;;  %v3679_v24 = vld [vmem:[#allocation8 + $0x8] sm:$0xff]   ;;  %v3683_v25 = vld [vmem:[#allocation8 + $0x50] sm:$0xff]   ;;  %p3218_p10 = pneg %p3217_p6 }
  0xa7   : > { %2321 = vmatpush3.bf16.msra.mxu1 %v3673_v22  ;;  %v3687_v26 = vld [vmem:[%s3567_s13 + $0x20] ss:$8 sps:$4 sm:$0xff]   ;;  %v3696_v29 = vld [vmem:[%s3567_s13 + $0x34] ss:$8 sps:$4 sm:$0xff]   ;;  %v3710_v33 = vld [vmem:[%s3567_s13 + $0x30] ss:$8 sps:$4 sm:$0xff]  }
  0xa8   : > { %2213 = vmatpush3.bf16.msra.mxu0 %v3609_v5  ;;  %2322 = vmatprep.subr.bf16.mxu1 %v3676_v23  ;;  %v3690_v27 = vld [vmem:[#allocation8 + $0x10] sm:$0xff]   ;;  %v3693_v28 = vld [vmem:[#allocation8 + $0x58] sm:$0xff]   ;;  %v3701_v31 = vld [vmem:[#allocation8 + $0x60] sm:$0xff]  }
  0xa9   : > { %2214 = vmatprep.subr.bf16.mxu0 %v3613_v6  ;;  %v3698_v30 = vld [vmem:[#allocation8 + $0x18] sm:$0xff]   ;;  %v3707_v32 = vld [vmem:[#allocation8 + $0x20] sm:$0xff]   ;;  %v3713_v34 = vld [vmem:[#allocation8 + $0x68] sm:$0xff]  }
  0xaa   : > { %v3716_v35 = vld [vmem:[%s3567_s13 + $0x44] ss:$8 sps:$4 sm:$0xff]   ;;  %v3719_v36 = vld [vmem:[#allocation8 + $0x28] sm:$0xff]   ;;  %v3726_v37 = vld [vmem:[%s3567_s13 + $0x40] ss:$8 sps:$4 sm:$0xff]  }
  0xab   : > { %2323 = vmatpush3.bf16.msra.mxu1 %v3679_v24  ;;  %v3729_v38 = vld [vmem:[%s3567_s13 + $0x54] ss:$8 sps:$4 sm:$0xff]   ;;  %v3734_v39 = vld [vmem:[%s3567_s13 + $0x50] ss:$8 sps:$4 sm:$0xff]   ;;  %v3737_v40 = vld [vmem:[%s3567_s13 + $0x64] ss:$8 sps:$4 sm:$0xff]  }
  0xac   : > { %2215 = vmatpush3.bf16.msra.mxu0 %v3617_v7  ;;  %2324 = vmatprep.subr.bf16.mxu1 %v3683_v25  ;;  %v3742_v41 = vld [vmem:[%s3567_s13 + $0x60] ss:$8 sps:$4 sm:$0xff]   ;;  %v3745_v42 = vld [vmem:[%s3567_s13 + $0x74] ss:$8 sps:$4 sm:$0xff]   ;;  %v3750_v43 = vld [vmem:[%s3567_s13 + $0x70] ss:$8 sps:$4 sm:$0xff]  }
  0xad   : > { %2216 = vmatprep.subr.bf16.mxu0 %v3621_v8  ;;  %v3753_v44 = vld [vmem:[%s3567_s13 + $0x84] ss:$8 sps:$4 sm:$0xff]   ;;  %v3758_v45 = vld [vmem:[%s3567_s13 + $0x80] ss:$8 sps:$4 sm:$0xff]   ;;  %v3761_v46 = vld [vmem:[%s3567_s13 + $0x94] ss:$8 sps:$4 sm:$0xff]  }
  0xae   : > { %v3766_v47 = vld [vmem:[%s3567_s13 + $0x90] ss:$8 sps:$4 sm:$0xff]   ;;  %v3769_v48 = vld [vmem:[%s3567_s13 + $0xa4] ss:$8 sps:$4 sm:$0xff]   ;;  %v3774_v49 = vld [vmem:[%s3567_s13 + $0xa0] ss:$8 sps:$4 sm:$0xff]  }
  0xaf   : > { %2325 = vmatpush3.bf16.msra.mxu1 %v3690_v27  ;;  %4294 = vst [vmem:[#allocation16_spill] sm:$0xff] %v3766_v47  ;;  %4295 = vst [vmem:[#allocation17_spill] sm:$0xff] %v3769_v48  ;;  %v3777_v50 = vld [vmem:[%s3567_s13 + $0xb4] ss:$8 sps:$4 sm:$0xff]   ;;  %v3781_v51 = vld [vmem:[#allocation8 + $0x70] sm:$0xff]  }
  0xb0   : > { %2217 = vmatpush3.bf16.msra.mxu0 %v3624_v9  ;;  %2326 = vmatprep.subr.bf16.mxu1 %v3693_v28  ;;  %4296 = vst [vmem:[#allocation18_spill] sm:$0xff] %v3774_v49  ;;  %4297 = vst [vmem:[#allocation19_spill] sm:$0xff] %v3777_v50  ;;  %v3783_v52 = vld [vmem:[#allocation8 + $0x30] sm:$0xff]   ;;  %v3786_v53 = vld [vmem:[%s3567_s13 + $0xb0] ss:$8 sps:$4 sm:$0xff]  }
  0xb1   : > { %2218 = vmatprep.subr.bf16.mxu0 %v3628_v10  ;;  %4298 = vst [vmem:[#allocation20_spill] sm:$0xff] %v3786_v53  ;;  %v3790_v54 = vld [vmem:[%s3567_s13 + $0xc4] ss:$8 sps:$4 sm:$0xff]   ;;  %v3803_v57 = vld [vmem:[%s3567_s13 + $0xc0] ss:$8 sps:$4 sm:$0xff]  }
  0xb2   : > { %4299 = vst [vmem:[#allocation21_spill] sm:$0xff] %v3790_v54  ;;  %v3793_v55 = vld [vmem:[#allocation8 + $0x78] sm:$0xff]   ;;  %4300 = vst [vmem:[#allocation22_spill] sm:$0xff] %v3803_v57  ;;  %v3806_v58 = vld [vmem:[%s3567_s13 + $0xd4] ss:$8 sps:$4 sm:$0xff]  }
  0xb3   : > { %2327 = vmatpush3.bf16.msra.mxu1 %v3698_v30  ;;  %v3795_v56 = vld [vmem:[#allocation8 + $0x38] sm:$0xff]   ;;  %4301 = vst [vmem:[#allocation23_spill] sm:$0xff] %v3806_v58  ;;  %v3811_v59 = vld [vmem:[%s3567_s13 + $0xd0] ss:$8 sps:$4 sm:$0xff]   ;;  %v3822_v62 = vld [vmem:[%s3567_s13 + $0xf4] ss:$8 sps:$4 sm:$0xff]  }
  0xb4   : > { %2219 = vmatpush3.bf16.msra.mxu0 %v3637_v12  ;;  %2328 = vmatprep.subr.bf16.mxu1 %v3701_v31  ;;  %4302 = vst [vmem:[#allocation24_spill] sm:$0xff] %v3811_v59  ;;  %v3814_v60 = vld [vmem:[%s3567_s13 + $0xe4] ss:$8 sps:$4 sm:$0xff]   ;;  %v3819_v61 = vld [vmem:[%s3567_s13 + $0xe0] ss:$8 sps:$4 sm:$0xff]   ;;  %4305 = vst [vmem:[#allocation27_spill] sm:$0xff] %v3822_v62 }
  0xb5   : > { %2220 = vmatprep.subr.bf16.mxu0 %v3641_v13  ;;  %4303 = vst [vmem:[#allocation25_spill] sm:$0xff] %v3814_v60  ;;  %4304 = vst [vmem:[#allocation26_spill] sm:$0xff] %v3819_v61  ;;  %v3827_v63 = vld [vmem:[%s3567_s13 + $0xf0] ss:$8 sps:$4 sm:$0xff]  }
  0xb6   : > { %4306 = vst [vmem:[#allocation28_spill] sm:$0xff] %v3827_v63 }
  0xb7   : > { %2329 = vmatpush3.bf16.msra.mxu1 %v3707_v32 }
  0xb8   : > { %2221 = vmatpush3.bf16.msra.mxu0 %v3645_v14  ;;  %2330 = vmatprep.subr.bf16.mxu1 %v3713_v34 }
  0xb9   : > { %2222 = vmatprep.subr.bf16.mxu0 %v3649_v15 }
  0xbb   : > { %2331 = vmatpush3.bf16.msra.mxu1 %v3719_v36 }
  0xbc   : > { %2223 = vmatpush3.bf16.msra.mxu0 %v3653_v16  ;;  %2332 = vmatprep.subr.bf16.mxu1 %v3781_v51 }
  0xbf   : > { %670 = vmatmul.mubr.bf16.vlgmr.msra.gmra.mrb[0].mxu0 %v3657_v17  ;;  %2333 = vmatpush3.bf16.msra.mxu1 %v3783_v52 }
  0xc0   : > { %677 = vmatprep.mubr.bf16.mxu0 %v3661_v18  ;;  %2334 = vmatprep.subr.bf16.mxu1 %v3793_v55 }
  0xc3   : > { %2335 = vmatpush3.bf16.msra.mxu1 %v3795_v56 }
  0xc4   : > { %2544 = vmatprep.subr.bf16.mxu1 %v3671_v21 }
  0xc7   : > { %678 = vmatmul.mubr.bf16.gmra.mrb[4].mxu0 %v3666_v19 }
  0xc8   : > { %685 = vmatprep.mubr.bf16.mxu0 %v3669_v20 }
  0xcf   : > { %686 = vmatmul.mubr.bf16.gmra.mrb[8].mxu0 %v3687_v26 }
  0xd0   : > { %693 = vmatprep.mubr.bf16.mxu0 %v3696_v29 }
  0xd7   : > { %694 = vmatmul.mubr.bf16.gmra.mrb[12].mxu0 %v3710_v33 }
  0xd8   : > { %701 = vmatprep.mubr.bf16.mxu0 %v3716_v35 }
  0xdf   : > { %702 = vmatmul.mubr.bf16.gmra.mrb[16].mxu0 %v3726_v37 }
  0xe0   : > { %709 = vmatprep.mubr.bf16.mxu0 %v3729_v38 }
  0xe7   : > { %710 = vmatmul.mubr.bf16.gmra.mrb[20].mxu0 %v3734_v39 }
  0xe8   : > { %717 = vmatprep.mubr.bf16.mxu0 %v3737_v40 }
  0xef   : > { %718 = vmatmul.mubr.bf16.gmra.mrb[24].mxu0 %v3742_v41 }
  0xf0   : > { %725 = vmatprep.mubr.bf16.mxu0 %v3745_v42 }
  0xf7   : > { %726 = vmatmul.mubr.bf16.gmra.mrb[28].mxu0 %v3750_v43 }
  0xf8   : > { %733 = vmatprep.mubr.bf16.mxu0 %v3753_v44 }
  0xff   : > { %734 = vmatmul.mubr.bf16.gmra.mrb[32].mxu0 %v3758_v45 }
 0x100   : > { %741 = vmatprep.mubr.bf16.mxu0 %v3761_v46 }
 0x107   : > { %742 = vmatmul.mubr.bf16.gmra.mrb[36].mxu0 %v3766_v47 }
 0x108   : > { %749 = vmatprep.mubr.bf16.mxu0 %v3769_v48 }
 0x10f   : > { %750 = vmatmul.mubr.bf16.gmra.mrb[40].mxu0 %v3774_v49 }
 0x110   : > { %757 = vmatprep.mubr.bf16.mxu0 %v3777_v50 }
 0x117   : > { %758 = vmatmul.mubr.bf16.gmra.mrb[44].mxu0 %v3786_v53 }
 0x118   : > { %765 = vmatprep.mubr.bf16.mxu0 %v3790_v54 }
 0x11f   : > { %766 = vmatmul.mubr.bf16.gmra.mrb[48].mxu0 %v3803_v57 }
 0x120   : > { %773 = vmatprep.mubr.bf16.mxu0 %v3806_v58 }
 0x127   : > { %774 = vmatmul.mubr.bf16.gmra.mrb[52].mxu0 %v3811_v59 }
 0x128   : > { %781 = vmatprep.mubr.bf16.mxu0 %v3814_v60 }
 0x12f   : > { %782 = vmatmul.mubr.bf16.gmra.mrb[56].mxu0 %v3819_v61 }
 0x130   : > { %789 = vmatprep.mubr.bf16.mxu0 %v3822_v62 }
 0x137   : > { %790 = vmatmul.mubr.bf16.gmra.mrb[60].mxu0 %v3827_v63 }
 0x138   : > { %1190 = vmatprep.mubr.bf16.mxu0 %v3632_v11 }
 0x192   : > { %v2224_v58 = vpop.f32.mrb[0].mxu0 }
 0x193   : > { %v2225_v57 = vpop.f32.mrb[1].mxu0 }
 0x194   : > { %v2226_v54 = vadd.f32 %v2225_v57, %v2224_v58  ;;  %v2227_v59 = vpop.f32.mrb[2].mxu0 }
 0x195   : > { %v2228_v53 = vpop.f32.mrb[3].mxu0 }
 0x196   : > { %v2229_v60 = vadd.f32 %v2228_v53, %v2227_v59 }
 0x198   : > { %v798_v50 = vpack.c.bf16 %v2229_v60, %v2226_v54 }
 0x19a   : > { %v2230_v49 = vpop.f32.mrb[4].mxu0  ;;  %981 = vmatprep.mubr.bf16.mxu1 %v798_v50 }
 0x19b   : > { %v2231_v48 = vpop.f32.mrb[5].mxu0  ;;  %982 = vmatmul.mubr.bf16.vlgmr.msra.gmra.mrb[0].mxu1 %v3593_v1 }
 0x19c   : > { %v2232_v61 = vadd.f32 %v2231_v48, %v2230_v49  ;;  %v2233_v62 = vpop.f32.mrb[6].mxu0  ;;  %2545 = vmatpush3.bf16.msra.mxu1 %v3673_v22 }
 0x19d   : > { %v2234_v47 = vpop.f32.mrb[7].mxu0  ;;  %2546 = vmatprep.subr.bf16.mxu1 %v3676_v23 }
 0x19e   : > { %v2235_v11 = vadd.f32 %v2234_v47, %v2233_v62 }
 0x1a0   : > { %v799_v63 = vpack.c.bf16 %v2235_v11, %v2232_v61  ;;  %2547 = vmatpush3.bf16.msra.mxu1 %v3679_v24 }
 0x1a1   : > { %2548 = vmatprep.subr.bf16.mxu1 %v3683_v25 }
 0x1a2   : > { %v2236_v53 = vpop.f32.mrb[8].mxu0  ;;  %989 = vmatprep.mubr.bf16.mxu1 %v799_v63 }
 0x1a3   : > { %v2237_v54 = vpop.f32.mrb[9].mxu0  ;;  %990 = vmatmul.mubr.bf16.gmra.mrb[4].mxu1 %v3601_v3 }
 0x1a4   : > { %v2238_v50 = vadd.f32 %v2237_v54, %v2236_v53  ;;  %v2239_v1 = vpop.f32.mrb[10].mxu0  ;;  %2549 = vmatpush3.bf16.msra.mxu1 %v3690_v27 }
 0x1a5   : > { %v2240_v48 = vpop.f32.mrb[11].mxu0  ;;  %2550 = vmatprep.subr.bf16.mxu1 %v3693_v28 }
 0x1a6   : > { %v2241_v22 = vadd.f32 %v2240_v48, %v2239_v1 }
 0x1a8   : > { %v800_v23 = vpack.c.bf16 %v2241_v22, %v2238_v50  ;;  %2551 = vmatpush3.bf16.msra.mxu1 %v3698_v30 }
 0x1a9   : > { %2552 = vmatprep.subr.bf16.mxu1 %v3701_v31 }
 0x1aa   : > { %v2242_v24 = vpop.f32.mrb[12].mxu0  ;;  %997 = vmatprep.mubr.bf16.mxu1 %v800_v23 }
 0x1ab   : > { %v2243_v47 = vpop.f32.mrb[13].mxu0  ;;  %998 = vmatmul.mubr.bf16.gmra.mrb[8].mxu1 %v3609_v5 }
 0x1ac   : > { %v2244_v49 = vadd.f32 %v2243_v47, %v2242_v24  ;;  %v2245_v3 = vpop.f32.mrb[14].mxu0  ;;  %2553 = vmatpush3.bf16.msra.mxu1 %v3707_v32 }
 0x1ad   : > { %v2246_v57 = vpop.f32.mrb[15].mxu0  ;;  %2554 = vmatprep.subr.bf16.mxu1 %v3713_v34 }
 0x1ae   : > { %v2247_v58 = vadd.f32 %v2246_v57, %v2245_v3 }
 0x1b0   : > { %v801_v59 = vpack.c.bf16 %v2247_v58, %v2244_v49  ;;  %2555 = vmatpush3.bf16.msra.mxu1 %v3719_v36 }
 0x1b1   : > { %2556 = vmatprep.subr.bf16.mxu1 %v3781_v51 }
 0x1b2   : > { %v2248_v60 = vpop.f32.mrb[16].mxu0  ;;  %1005 = vmatprep.mubr.bf16.mxu1 %v801_v59 }
 0x1b3   : > { %v2249_v61 = vpop.f32.mrb[17].mxu0  ;;  %1006 = vmatmul.mubr.bf16.gmra.mrb[12].mxu1 %v3617_v7 }
 0x1b4   : > { %v2250_v62 = vadd.f32 %v2249_v61, %v2248_v60  ;;  %v2251_v5 = vpop.f32.mrb[18].mxu0  ;;  %2557 = vmatpush3.bf16.msra.mxu1 %v3783_v52 }
 0x1b5   : > { %v2252_v63 = vpop.f32.mrb[19].mxu0  ;;  %2558 = vmatprep.subr.bf16.mxu1 %v3793_v55 }
 0x1b6   : > { %v2253_v11 = vadd.f32 %v2252_v63, %v2251_v5 }
 0x1b8   : > { %v802_v53 = vpack.c.bf16 %v2253_v11, %v2250_v62  ;;  %2559 = vmatpush3.bf16.msra.mxu1 %v3795_v56 }
 0x1b9   : > { %2768 = vmatprep.subr.bf16.mxu1 %v3671_v21 }
 0x1ba   : > { %v2254_v54 = vpop.f32.mrb[20].mxu0  ;;  %1013 = vmatprep.mubr.bf16.mxu1 %v802_v53 }
 0x1bb   : > { %v2255_v50 = vpop.f32.mrb[21].mxu0  ;;  %1014 = vmatmul.mubr.bf16.gmra.mrb[16].mxu1 %v3624_v9 }
 0x1bc   : > { %v2256_v1 = vadd.f32 %v2255_v50, %v2254_v54  ;;  %v2257_v7 = vpop.f32.mrb[22].mxu0 }
 0x1bd   : > { %v2258_v48 = vpop.f32.mrb[23].mxu0 }
 0x1be   : > { %v2259_v22 = vadd.f32 %v2258_v48, %v2257_v7 }
 0x1c0   : > { %v803_v23 = vpack.c.bf16 %v2259_v22, %v2256_v1 }
 0x1c2   : > { %v2260_v24 = vpop.f32.mrb[24].mxu0  ;;  %1021 = vmatprep.mubr.bf16.mxu1 %v803_v23 }
 0x1c3   : > { %v2261_v47 = vpop.f32.mrb[25].mxu0  ;;  %1022 = vmatmul.mubr.bf16.gmra.mrb[20].mxu1 %v3637_v12 }
 0x1c4   : > { %v2262_v49 = vadd.f32 %v2261_v47, %v2260_v24  ;;  %v2263_v3 = vpop.f32.mrb[26].mxu0 }
 0x1c5   : > { %v2264_v57 = vpop.f32.mrb[27].mxu0 }
 0x1c6   : > { %v2265_v58 = vadd.f32 %v2264_v57, %v2263_v3 }
 0x1c8   : > { %v804_v21 = vpack.c.bf16 %v2265_v58, %v2262_v49 }
 0x1ca   : > { %v2266_v59 = vpop.f32.mrb[28].mxu0  ;;  %1029 = vmatprep.mubr.bf16.mxu1 %v804_v21 }
 0x1cb   : > { %v2267_v60 = vpop.f32.mrb[29].mxu0  ;;  %1030 = vmatmul.mubr.bf16.gmra.mrb[24].mxu1 %v3645_v14 }
 0x1cc   : > { %v2268_v9 = vadd.f32 %v2267_v60, %v2266_v59  ;;  %v2269_v61 = vpop.f32.mrb[30].mxu0 }
 0x1cd   : > { %v2270_v62 = vpop.f32.mrb[31].mxu0 }
 0x1ce   : > { %v2271_v5 = vadd.f32 %v2270_v62, %v2269_v61 }
 0x1d0   : > { %v805_v63 = vpack.c.bf16 %v2271_v5, %v2268_v9 }
 0x1d2   : > { %v2272_v11 = vpop.f32.mrb[32].mxu0  ;;  %1037 = vmatprep.mubr.bf16.mxu1 %v805_v63 }
 0x1d3   : > { %v2273_v53 = vpop.f32.mrb[33].mxu0  ;;  %1038 = vmatmul.mubr.bf16.gmra.mrb[28].mxu1 %v3653_v16 }
 0x1d4   : > { %v2274_v12 = vadd.f32 %v2273_v53, %v2272_v11  ;;  %v2275_v54 = vpop.f32.mrb[34].mxu0 }
 0x1d5   : > { %v2276_v50 = vpop.f32.mrb[35].mxu0 }
 0x1d6   : > { %v2277_v1 = vadd.f32 %v2276_v50, %v2275_v54 }
 0x1d8   : > { %v806_v7 = vpack.c.bf16 %v2277_v1, %v2274_v12 }
 0x1da   : > { %v2278_v48 = vpop.f32.mrb[36].mxu0  ;;  %1045 = vmatprep.mubr.bf16.mxu1 %v806_v7 }
 0x1db   : > { %v2279_v22 = vpop.f32.mrb[37].mxu0  ;;  %1046 = vmatmul.mubr.bf16.gmra.mrb[32].mxu1 %v3590_v0 }
 0x1dc   : > { %v2280_v14 = vadd.f32 %v2279_v22, %v2278_v48  ;;  %v2281_v23 = vpop.f32.mrb[38].mxu0 }
 0x1dd   : > { %v2282_v24 = vpop.f32.mrb[39].mxu0 }
 0x1de   : > { %v2283_v47 = vadd.f32 %v2282_v24, %v2281_v23 }
 0x1e0   : > { %v807_v49 = vpack.c.bf16 %v2283_v47, %v2280_v14 }
 0x1e2   : > { %v2284_v3 = vpop.f32.mrb[40].mxu0  ;;  %1053 = vmatprep.mubr.bf16.mxu1 %v807_v49 }
 0x1e3   : > { %v2285_v57 = vpop.f32.mrb[41].mxu0  ;;  %1054 = vmatmul.mubr.bf16.gmra.mrb[36].mxu1 %v3597_v2 }
 0x1e4   : > { %v2286_v16 = vadd.f32 %v2285_v57, %v2284_v3  ;;  %v2287_v58 = vpop.f32.mrb[42].mxu0 }
 0x1e5   : > { %v2288_v21 = vpop.f32.mrb[43].mxu0 }
 0x1e6   : > { %v2289_v59 = vadd.f32 %v2288_v21, %v2287_v58 }
 0x1e8   : > { %v808_v60 = vpack.c.bf16 %v2289_v59, %v2286_v16 }
 0x1ea   : > { %v2290_v9 = vpop.f32.mrb[44].mxu0  ;;  %1061 = vmatprep.mubr.bf16.mxu1 %v808_v60 }
 0x1eb   : > { %v2291_v61 = vpop.f32.mrb[45].mxu0  ;;  %1062 = vmatmul.mubr.bf16.gmra.mrb[40].mxu1 %v3605_v4 }
 0x1ec   : > { %v2292_v0 = vadd.f32 %v2291_v61, %v2290_v9  ;;  %v2293_v62 = vpop.f32.mrb[46].mxu0 }
 0x1ed   : > { %v2294_v5 = vpop.f32.mrb[47].mxu0 }
 0x1ee   : > { %v2295_v63 = vadd.f32 %v2294_v5, %v2293_v62 }
 0x1f0   : > { %v809_v11 = vpack.c.bf16 %v2295_v63, %v2292_v0 }
 0x1f2   : > { %v2296_v53 = vpop.f32.mrb[48].mxu0  ;;  %1069 = vmatprep.mubr.bf16.mxu1 %v809_v11 }
 0x1f3   : > { %v2297_v12 = vpop.f32.mrb[49].mxu0  ;;  %1070 = vmatmul.mubr.bf16.gmra.mrb[44].mxu1 %v3613_v6 }
 0x1f4   : > { %v2298_v2 = vadd.f32 %v2297_v12, %v2296_v53  ;;  %v2299_v54 = vpop.f32.mrb[50].mxu0 }
 0x1f5   : > { %v2300_v50 = vpop.f32.mrb[51].mxu0 }
 0x1f6   : > { %v2301_v1 = vadd.f32 %v2300_v50, %v2299_v54 }
 0x1f8   : > { %v810_v7 = vpack.c.bf16 %v2301_v1, %v2298_v2 }
 0x1fa   : > { %v2302_v48 = vpop.f32.mrb[52].mxu0  ;;  %1077 = vmatprep.mubr.bf16.mxu1 %v810_v7 }
 0x1fb   : > { %v2303_v22 = vpop.f32.mrb[53].mxu0  ;;  %1078 = vmatmul.mubr.bf16.gmra.mrb[48].mxu1 %v3621_v8 }
 0x1fc   : > { %v2304_v4 = vadd.f32 %v2303_v22, %v2302_v48  ;;  %v2305_v14 = vpop.f32.mrb[54].mxu0 }
 0x1fd   : > { %v2306_v23 = vpop.f32.mrb[55].mxu0 }
 0x1fe   : > { %v2307_v24 = vadd.f32 %v2306_v23, %v2305_v14 }
 0x200   : > { %v811_v47 = vpack.c.bf16 %v2307_v24, %v2304_v4 }
 0x202   : > { %v2308_v49 = vpop.f32.mrb[56].mxu0  ;;  %1085 = vmatprep.mubr.bf16.mxu1 %v811_v47 }
 0x203   : > { %v2309_v3 = vpop.f32.mrb[57].mxu0  ;;  %1086 = vmatmul.mubr.bf16.gmra.mrb[52].mxu1 %v3628_v10  ;;  %v3866_v10 = vld [vmem:[%s4251_s4] ss:$0 sm:$0xff] }
 0x204   : > { %v2310_v6 = vadd.f32 %v2309_v3, %v2308_v49  ;;  %v2311_v57 = vpop.f32.mrb[58].mxu0 }
 0x205   : > { %v2312_v16 = vpop.f32.mrb[59].mxu0 }
 0x206   : > { %v2313_v58 = vadd.f32 %v2312_v16, %v2311_v57 }
 0x208   : > { %v812_v21 = vpack.c.bf16 %v2313_v58, %v2310_v6 }
 0x20a   : > { %v2314_v59 = vpop.f32.mrb[60].mxu0  ;;  %1093 = vmatprep.mubr.bf16.mxu1 %v812_v21 }
 0x20b   : > { %v2315_v60 = vpop.f32.mrb[61].mxu0  ;;  %1094 = vmatmul.mubr.bf16.gmra.mrb[56].mxu1 %v3641_v13 }
 0x20c   : > { %v2316_v8 = vadd.f32 %v2315_v60, %v2314_v59  ;;  %v2317_v9 = vpop.f32.mrb[62].mxu0 }
 0x20d   : > { %v2318_v61 = vpop.f32.mrb[63].mxu0 }
 0x20e   : > { %v2319_v0 = vadd.f32 %v2318_v61, %v2317_v9 }
 0x210   : > { %v813_v62 = vpack.c.bf16 %v2319_v0, %v2316_v8 }
 0x212   : > { %1101 = vmatprep.mubr.bf16.mxu1 %v813_v62 }
 0x213   : > { %1102 = vmatmul.mubr.bf16.gmra.mrb[60].mxu1 %v3649_v15 }
 0x26e   : > { %v2336_v5 = vpop.f32.mrb[0].mxu1 }
 0x26f   : > { %v2337_v63 = vpop.f32.mrb[1].mxu1 }
 0x270   : > { %v2338_v11 = vadd.f32 %v2337_v63, %v2336_v5  ;;  %v2339_v53 = vpop.f32.mrb[2].mxu1 }
 0x271   : > { %v2340_v12 = vpop.f32.mrb[3].mxu1 }
 0x272   : > { %v984_v13 = vadd.f32 %v2338_v11, %v3866_v10  ;;  %v2341_v2 = vadd.f32 %v2340_v12, %v2339_v53 }
 0x274   : > { %v987_v54 = vadd.f32 %v2341_v2, %v3866_v10  ;;  %v1110_v50 = vmax.f32 %v984_v13, 0.0 }
 0x276   : > { %v1111_v1 = vmax.f32 %v987_v54, 0.0  ;;  %v2342_v7 = vpop.f32.mrb[4].mxu1 }
 0x277   : > { %v2343_v48 = vpop.f32.mrb[5].mxu1 }
 0x278   : > { %v3870_v15 = vpack.c.bf16 %v1111_v1, %v1110_v50  ;;  %v2344_v22 = vadd.f32 %v2343_v48, %v2342_v7  ;;  %v2345_v4 = vpop.f32.mrb[6].mxu1 }
 0x279   : > { %v2346_v14 = vpop.f32.mrb[7].mxu1 }
 0x27a   : > { %v992_v23 = vadd.f32 %v2344_v22, %v3866_v10  ;;  %v2347_v24 = vadd.f32 %v2346_v14, %v2345_v4 }
 0x27c   : > { %v995_v47 = vadd.f32 %v2347_v24, %v3866_v10  ;;  %v1112_v49 = vmax.f32 %v992_v23, 0.0 }
 0x27e   : > { %v1113_v3 = vmax.f32 %v995_v47, 0.0  ;;  %v2348_v6 = vpop.f32.mrb[8].mxu1 }
 0x27f   : > { %v2349_v57 = vpop.f32.mrb[9].mxu1 }
 0x280   : > { %v3874_v16 = vpack.c.bf16 %v1113_v3, %v1112_v49  ;;  %v2350_v58 = vadd.f32 %v2349_v57, %v2348_v6  ;;  %v2351_v21 = vpop.f32.mrb[10].mxu1 }
 0x281   : > { %v2352_v59 = vpop.f32.mrb[11].mxu1 }
 0x282   : > { %v1000_v60 = vadd.f32 %v2350_v58, %v3866_v10  ;;  %v2353_v8 = vadd.f32 %v2352_v59, %v2351_v21 }
 0x284   : > { %v1003_v9 = vadd.f32 %v2353_v8, %v3866_v10  ;;  %v1114_v61 = vmax.f32 %v1000_v60, 0.0 }
 0x286   : > { %v1115_v0 = vmax.f32 %v1003_v9, 0.0  ;;  %v2354_v62 = vpop.f32.mrb[12].mxu1 }
 0x287   : > { %v2355_v5 = vpop.f32.mrb[13].mxu1 }
 0x288   : > { %v3878_v63 = vpack.c.bf16 %v1115_v0, %v1114_v61  ;;  %v2356_v11 = vadd.f32 %v2355_v5, %v2354_v62  ;;  %v2357_v53 = vpop.f32.mrb[14].mxu1 }
 0x289   : > { %v2358_v12 = vpop.f32.mrb[15].mxu1 }
 0x28a   : > { %v1008_v13 = vadd.f32 %v2356_v11, %v3866_v10  ;;  %v2359_v2 = vadd.f32 %v2358_v12, %v2357_v53 }
 0x28c   : > { %v1011_v54 = vadd.f32 %v2359_v2, %v3866_v10  ;;  %v1116_v50 = vmax.f32 %v1008_v13, 0.0 }
 0x28e   : > { %v1117_v1 = vmax.f32 %v1011_v54, 0.0  ;;  %v2360_v7 = vpop.f32.mrb[16].mxu1 }
 0x28f   : > { %v2361_v48 = vpop.f32.mrb[17].mxu1 }
 0x290   : > { %v3882_v22 = vpack.c.bf16 %v1117_v1, %v1116_v50  ;;  %v2362_v4 = vadd.f32 %v2361_v48, %v2360_v7  ;;  %v2363_v14 = vpop.f32.mrb[18].mxu1 }
 0x291   : > { %v2364_v23 = vpop.f32.mrb[19].mxu1 }
 0x292   : > { %v1016_v24 = vadd.f32 %v2362_v4, %v3866_v10  ;;  %v2365_v47 = vadd.f32 %v2364_v23, %v2363_v14 }
 0x294   : > { %v1019_v49 = vadd.f32 %v2365_v47, %v3866_v10  ;;  %v1118_v3 = vmax.f32 %v1016_v24, 0.0 }
 0x296   : > { %v1119_v6 = vmax.f32 %v1019_v49, 0.0  ;;  %v2366_v57 = vpop.f32.mrb[20].mxu1 }
 0x297   : > { %v2367_v58 = vpop.f32.mrb[21].mxu1 }
 0x298   : > { %v3886_v21 = vpack.c.bf16 %v1119_v6, %v1118_v3  ;;  %v2368_v59 = vadd.f32 %v2367_v58, %v2366_v57  ;;  %v2369_v60 = vpop.f32.mrb[22].mxu1 }
 0x299   : > { %v2370_v8 = vpop.f32.mrb[23].mxu1 }
 0x29a   : > { %v1024_v9 = vadd.f32 %v2368_v59, %v3866_v10  ;;  %v2371_v61 = vadd.f32 %v2370_v8, %v2369_v60 }
 0x29c   : > { %v1027_v0 = vadd.f32 %v2371_v61, %v3866_v10  ;;  %v1120_v62 = vmax.f32 %v1024_v9, 0.0 }
 0x29e   : > { %v1121_v5 = vmax.f32 %v1027_v0, 0.0  ;;  %v2372_v11 = vpop.f32.mrb[24].mxu1 }
 0x29f   : > { %v2373_v53 = vpop.f32.mrb[25].mxu1 }
 0x2a0   : > { %v3890_v12 = vpack.c.bf16 %v1121_v5, %v1120_v62  ;;  %v2374_v13 = vadd.f32 %v2373_v53, %v2372_v11  ;;  %v2375_v2 = vpop.f32.mrb[26].mxu1 }
 0x2a1   : > { %v2376_v54 = vpop.f32.mrb[27].mxu1 }
 0x2a2   : > { %v1032_v50 = vadd.f32 %v2374_v13, %v3866_v10  ;;  %v2377_v1 = vadd.f32 %v2376_v54, %v2375_v2 }
 0x2a4   : > { %v1035_v7 = vadd.f32 %v2377_v1, %v3866_v10  ;;  %v1122_v48 = vmax.f32 %v1032_v50, 0.0 }
 0x2a6   : > { %v1123_v4 = vmax.f32 %v1035_v7, 0.0  ;;  %v2378_v14 = vpop.f32.mrb[28].mxu1 }
 0x2a7   : > { %v2379_v23 = vpop.f32.mrb[29].mxu1 }
 0x2a8   : > { %v3894_v24 = vpack.c.bf16 %v1123_v4, %v1122_v48  ;;  %v2380_v47 = vadd.f32 %v2379_v23, %v2378_v14  ;;  %v2381_v49 = vpop.f32.mrb[30].mxu1 }
 0x2a9   : > { %v2382_v3 = vpop.f32.mrb[31].mxu1 }
 0x2aa   : > { %v1040_v6 = vadd.f32 %v2380_v47, %v3866_v10  ;;  %v2383_v57 = vadd.f32 %v2382_v3, %v2381_v49 }
 0x2ac   : > { %v1043_v58 = vadd.f32 %v2383_v57, %v3866_v10  ;;  %v1124_v59 = vmax.f32 %v1040_v6, 0.0 }
 0x2ae   : > { %v1125_v60 = vmax.f32 %v1043_v58, 0.0  ;;  %v2384_v8 = vpop.f32.mrb[32].mxu1 }
 0x2af   : > { %v2385_v9 = vpop.f32.mrb[33].mxu1 }
 0x2b0   : > { %v3898_v61 = vpack.c.bf16 %v1125_v60, %v1124_v59  ;;  %v2386_v0 = vadd.f32 %v2385_v9, %v2384_v8  ;;  %v2387_v62 = vpop.f32.mrb[34].mxu1 }
 0x2b1   : > { %v2388_v5 = vpop.f32.mrb[35].mxu1 }
 0x2b2   : > { %v1048_v11 = vadd.f32 %v2386_v0, %v3866_v10  ;;  %v2389_v53 = vadd.f32 %v2388_v5, %v2387_v62 }
 0x2b4   : > { %v1051_v13 = vadd.f32 %v2389_v53, %v3866_v10  ;;  %v1126_v2 = vmax.f32 %v1048_v11, 0.0 }
 0x2b6   : > { %v1127_v54 = vmax.f32 %v1051_v13, 0.0  ;;  %v2390_v50 = vpop.f32.mrb[36].mxu1 }
 0x2b7   : > { %v2391_v1 = vpop.f32.mrb[37].mxu1 }
 0x2b8   : > { %v2392_v7 = vadd.f32 %v2391_v1, %v2390_v50  ;;  %v2393_v48 = vpop.f32.mrb[38].mxu1  ;;  %v3902_v4 = vpack.c.bf16 %v1127_v54, %v1126_v2 }
 0x2b9   : > { %v2394_v14 = vpop.f32.mrb[39].mxu1 }
 0x2ba   : > { %v1056_v23 = vadd.f32 %v2392_v7, %v3866_v10  ;;  %v2395_v47 = vadd.f32 %v2394_v14, %v2393_v48  ;;  %2432 = vmatprep.subr.bf16.mxu0 %v3902_v4 }
 0x2bb   : > { %2433 = vmatpush3.bf16.msra.mxu0 %v3870_v15 }
 0x2bc   : > { %v1059_v49 = vadd.f32 %v2395_v47, %v3866_v10  ;;  %v1128_v3 = vmax.f32 %v1056_v23, 0.0 }
 0x2be   : > { %v1129_v6 = vmax.f32 %v1059_v49, 0.0  ;;  %v2396_v57 = vpop.f32.mrb[40].mxu1 }
 0x2bf   : > { %v2397_v58 = vpop.f32.mrb[41].mxu1 }
 0x2c0   : > { %v2398_v59 = vadd.f32 %v2397_v58, %v2396_v57  ;;  %v2399_v60 = vpop.f32.mrb[42].mxu1  ;;  %v3908_v8 = vpack.c.bf16 %v1129_v6, %v1128_v3 }
 0x2c1   : > { %v2400_v9 = vpop.f32.mrb[43].mxu1 }
 0x2c2   : > { %v1064_v0 = vadd.f32 %v2398_v59, %v3866_v10  ;;  %v2401_v62 = vadd.f32 %v2400_v9, %v2399_v60  ;;  %2434 = vmatprep.subr.bf16.mxu0 %v3908_v8 }
 0x2c3   : > { %2435 = vmatpush3.bf16.msra.mxu0 %v3874_v16 }
 0x2c4   : > { %v1067_v5 = vadd.f32 %v2401_v62, %v3866_v10  ;;  %v1130_v11 = vmax.f32 %v1064_v0, 0.0 }
 0x2c6   : > { %v1131_v53 = vmax.f32 %v1067_v5, 0.0  ;;  %v2402_v13 = vpop.f32.mrb[44].mxu1 }
 0x2c7   : > { %v2403_v2 = vpop.f32.mrb[45].mxu1 }
 0x2c8   : > { %v2404_v54 = vadd.f32 %v2403_v2, %v2402_v13  ;;  %v2405_v50 = vpop.f32.mrb[46].mxu1  ;;  %v3914_v1 = vpack.c.bf16 %v1131_v53, %v1130_v11 }
 0x2c9   : > { %v2406_v7 = vpop.f32.mrb[47].mxu1 }
 0x2ca   : > { %v1072_v48 = vadd.f32 %v2404_v54, %v3866_v10  ;;  %v2407_v14 = vadd.f32 %v2406_v7, %v2405_v50  ;;  %2436 = vmatprep.subr.bf16.mxu0 %v3914_v1 }
 0x2cb   : > { %2437 = vmatpush3.bf16.msra.mxu0 %v3878_v63 }
 0x2cc   : > { %v1075_v23 = vadd.f32 %v2407_v14, %v3866_v10  ;;  %v1132_v47 = vmax.f32 %v1072_v48, 0.0 }
 0x2ce   : > { %v1133_v49 = vmax.f32 %v1075_v23, 0.0  ;;  %v2408_v3 = vpop.f32.mrb[48].mxu1 }
 0x2cf   : > { %v2409_v6 = vpop.f32.mrb[49].mxu1 }
 0x2d0   : > { %v2410_v57 = vadd.f32 %v2409_v6, %v2408_v3  ;;  %v2411_v58 = vpop.f32.mrb[50].mxu1  ;;  %v3920_v59 = vpack.c.bf16 %v1133_v49, %v1132_v47 }
 0x2d1   : > { %v2412_v60 = vpop.f32.mrb[51].mxu1 }
 0x2d2   : > { %v1080_v9 = vadd.f32 %v2410_v57, %v3866_v10  ;;  %v2413_v0 = vadd.f32 %v2412_v60, %v2411_v58  ;;  %2438 = vmatprep.subr.bf16.mxu0 %v3920_v59 }
 0x2d3   : > { %2439 = vmatpush3.bf16.msra.mxu0 %v3882_v22 }
 0x2d4   : > { %v1083_v62 = vadd.f32 %v2413_v0, %v3866_v10  ;;  %v1134_v5 = vmax.f32 %v1080_v9, 0.0 }
 0x2d6   : > { %v1135_v11 = vmax.f32 %v1083_v62, 0.0  ;;  %v2414_v53 = vpop.f32.mrb[52].mxu1 }
 0x2d7   : > { %v2415_v13 = vpop.f32.mrb[53].mxu1 }
 0x2d8   : > { %v2416_v2 = vadd.f32 %v2415_v13, %v2414_v53  ;;  %v2417_v54 = vpop.f32.mrb[54].mxu1  ;;  %v3926_v50 = vpack.c.bf16 %v1135_v11, %v1134_v5 }
 0x2d9   : > { %v2418_v7 = vpop.f32.mrb[55].mxu1 }
 0x2da   : > { %v1088_v48 = vadd.f32 %v2416_v2, %v3866_v10  ;;  %v2419_v14 = vadd.f32 %v2418_v7, %v2417_v54  ;;  %2440 = vmatprep.subr.bf16.mxu0 %v3926_v50 }
 0x2db   : > { %2441 = vmatpush3.bf16.msra.mxu0 %v3886_v21 }
 0x2dc   : > { %v1091_v23 = vadd.f32 %v2419_v14, %v3866_v10  ;;  %v1136_v47 = vmax.f32 %v1088_v48, 0.0 }
 0x2de   : > { %v1137_v49 = vmax.f32 %v1091_v23, 0.0  ;;  %v2420_v3 = vpop.f32.mrb[56].mxu1 }
 0x2df   : > { %v2421_v6 = vpop.f32.mrb[57].mxu1 }
 0x2e0   : > { %v2422_v57 = vadd.f32 %v2421_v6, %v2420_v3  ;;  %v2423_v58 = vpop.f32.mrb[58].mxu1  ;;  %v3932_v60 = vpack.c.bf16 %v1137_v49, %v1136_v47 }
 0x2e1   : > { %v2424_v9 = vpop.f32.mrb[59].mxu1 }
 0x2e2   : > { %v1096_v0 = vadd.f32 %v2422_v57, %v3866_v10  ;;  %v2425_v62 = vadd.f32 %v2424_v9, %v2423_v58  ;;  %2442 = vmatprep.subr.bf16.mxu0 %v3932_v60 }
 0x2e3   : > { %2443 = vmatpush3.bf16.msra.mxu0 %v3890_v12 }
 0x2e4   : > { %v1099_v5 = vadd.f32 %v2425_v62, %v3866_v10  ;;  %v1138_v11 = vmax.f32 %v1096_v0, 0.0 }
 0x2e6   : > { %v1139_v53 = vmax.f32 %v1099_v5, 0.0  ;;  %v2426_v13 = vpop.f32.mrb[60].mxu1 }
 0x2e7   : > { %v2427_v2 = vpop.f32.mrb[61].mxu1 }
 0x2e8   : > { %v2428_v54 = vadd.f32 %v2427_v2, %v2426_v13  ;;  %v2429_v7 = vpop.f32.mrb[62].mxu1  ;;  %v3938_v48 = vpack.c.bf16 %v1139_v53, %v1138_v11  ;;  %v3064_v13 = vld [vmem:[#allocation8] sm:$0xff]  }
 0x2e9   : > { %v2430_v14 = vpop.f32.mrb[63].mxu1 }
 0x2ea   : > { %v1104_v23 = vadd.f32 %v2428_v54, %v3866_v10  ;;  %v2431_v47 = vadd.f32 %v2430_v14, %v2429_v7  ;;  %2444 = vmatprep.subr.bf16.mxu0 %v3938_v48  ;;  %v3065_v54 = vld [vmem:[#allocation8 + $0x48] sm:$0xff]  }
 0x2eb   : > { %2445 = vmatpush3.bf16.msra.mxu0 %v3894_v24 }
 0x2ec   : > { %v1107_v49 = vadd.f32 %v2431_v47, %v3866_v10  ;;  %v1140_v3 = vmax.f32 %v1104_v23, 0.0  ;;  %v3066_v23 = vld [vmem:[#allocation8 + $0x8] sm:$0xff]  }
 0x2ee   : > { %v1141_v6 = vmax.f32 %v1107_v49, 0.0 }
 0x2f0   : > { %v3944_v57 = vpack.c.bf16 %v1141_v6, %v1140_v3 }
 0x2f2   : > { %2446 = vmatprep.subr.bf16.mxu0 %v3944_v57 }
 0x2f3   : > { %2447 = vmatpush3.bf16.msra.mxu0 %v3898_v61 }
 0x2f6   : > { %1191 = vmatmul.mubr.bf16.vlgmr.msra.gmra.mrb[64].mxu0 %v3657_v17  ;;  %v4307_v17 = vld [vmem:[#allocation16_spill] sm:$0xff] }
 0x2f7   : > { %1198 = vmatprep.mubr.bf16.mxu0 %v3661_v18  ;;  %v4308_v18 = vld [vmem:[#allocation17_spill] sm:$0xff] }
 0x2fe   : > { %1199 = vmatmul.mubr.bf16.gmra.mrb[68].mxu0 %v3666_v19  ;;  %v4309_v19 = vld [vmem:[#allocation18_spill] sm:$0xff] }
 0x2ff   : > { %1206 = vmatprep.mubr.bf16.mxu0 %v3669_v20  ;;  %v4310_v20 = vld [vmem:[#allocation19_spill] sm:$0xff] }
 0x306   : > { %1207 = vmatmul.mubr.bf16.gmra.mrb[72].mxu0 %v3687_v26  ;;  %v4311_v26 = vld [vmem:[#allocation20_spill] sm:$0xff] }
 0x307   : > { %1214 = vmatprep.mubr.bf16.mxu0 %v3696_v29  ;;  %v4312_v29 = vld [vmem:[#allocation21_spill] sm:$0xff] }
 0x30e   : > { %1215 = vmatmul.mubr.bf16.gmra.mrb[76].mxu0 %v3710_v33  ;;  %v4313_v33 = vld [vmem:[#allocation22_spill] sm:$0xff] }
 0x30f   : > { %1222 = vmatprep.mubr.bf16.mxu0 %v3716_v35  ;;  %v4314_v35 = vld [vmem:[#allocation23_spill] sm:$0xff] }
 0x316   : > { %1223 = vmatmul.mubr.bf16.gmra.mrb[80].mxu0 %v3726_v37  ;;  %v4315_v37 = vld [vmem:[#allocation24_spill] sm:$0xff] }
 0x317   : > { %1230 = vmatprep.mubr.bf16.mxu0 %v3729_v38  ;;  %v4316_v38 = vld [vmem:[#allocation25_spill] sm:$0xff] }
 0x31e   : > { %1231 = vmatmul.mubr.bf16.gmra.mrb[84].mxu0 %v3734_v39  ;;  %v4317_v39 = vld [vmem:[#allocation26_spill] sm:$0xff] }
 0x31f   : > { %1238 = vmatprep.mubr.bf16.mxu0 %v3737_v40  ;;  %v4318_v40 = vld [vmem:[#allocation27_spill] sm:$0xff] }
 0x326   : > { %1239 = vmatmul.mubr.bf16.gmra.mrb[88].mxu0 %v3742_v41  ;;  %v4319_v41 = vld [vmem:[#allocation28_spill] sm:$0xff] }
 0x327   : > { %1246 = vmatprep.mubr.bf16.mxu0 %v3745_v42  ;;  %v3063_v42 = vld [vmem:[%s3567_s13 + $0x4] ss:$8 sps:$4 sm:$0xff]  }
 0x32e   : > { %1247 = vmatmul.mubr.bf16.gmra.mrb[92].mxu0 %v3750_v43 }
 0x32f   : > { %1254 = vmatprep.mubr.bf16.mxu0 %v3753_v44 }
 0x336   : > { %1255 = vmatmul.mubr.bf16.gmra.mrb[96].mxu0 %v3758_v45 }
 0x337   : > { %1262 = vmatprep.mubr.bf16.mxu0 %v3761_v46 }
 0x33e   : > { %1263 = vmatmul.mubr.bf16.gmra.mrb[100].mxu0 %v4307_v17 }
 0x33f   : > { %1270 = vmatprep.mubr.bf16.mxu0 %v4308_v18 }
 0x346   : > { %1271 = vmatmul.mubr.bf16.gmra.mrb[104].mxu0 %v4309_v19 }
 0x347   : > { %1278 = vmatprep.mubr.bf16.mxu0 %v4310_v20 }
 0x34e   : > { %1279 = vmatmul.mubr.bf16.gmra.mrb[108].mxu0 %v4311_v26 }
 0x34f   : > { %1286 = vmatprep.mubr.bf16.mxu0 %v4312_v29 }
 0x356   : > { %1287 = vmatmul.mubr.bf16.gmra.mrb[112].mxu0 %v4313_v33 }
 0x357   : > { %1294 = vmatprep.mubr.bf16.mxu0 %v4314_v35 }
 0x35e   : > { %1295 = vmatmul.mubr.bf16.gmra.mrb[116].mxu0 %v4315_v37 }
 0x35f   : > { %1302 = vmatprep.mubr.bf16.mxu0 %v4316_v38 }
 0x366   : > { %1303 = vmatmul.mubr.bf16.gmra.mrb[120].mxu0 %v4317_v39 }
 0x367   : > { %1310 = vmatprep.mubr.bf16.mxu0 %v4318_v40 }
 0x36e   : > { %1311 = vmatmul.mubr.bf16.gmra.mrb[124].mxu0 %v4319_v41 }
 0x36f   : > { %1576 = vmatprep.mubr.bf16.mxu0 %v3063_v42 }
 0x3c9   : > { %v2448_v43 = vpop.f32.mrb[64].mxu0 }
 0x3ca   : > { %v2449_v44 = vpop.f32.mrb[65].mxu0 }
 0x3cb   : > { %v2450_v45 = vadd.f32 %v2449_v44, %v2448_v43  ;;  %v2451_v46 = vpop.f32.mrb[66].mxu0 }
 0x3cc   : > { %v2452_v58 = vpop.f32.mrb[67].mxu0 }
 0x3cd   : > { %v2453_v9 = vadd.f32 %v2452_v58, %v2451_v46 }
 0x3cf   : > { %v1319_v0 = vpack.c.bf16 %v2453_v9, %v2450_v45 }
 0x3d1   : > { %v2454_v62 = vpop.f32.mrb[68].mxu0  ;;  %1367 = vmatprep.mubr.bf16.mxu1 %v1319_v0 }
 0x3d2   : > { %v2455_v5 = vpop.f32.mrb[69].mxu0  ;;  %1368 = vmatmul.mubr.bf16.vlgmr.msra.gmra.mrb[64].mxu1 %v3870_v15 }
 0x3d3   : > { %v2456_v11 = vadd.f32 %v2455_v5, %v2454_v62  ;;  %v2457_v53 = vpop.f32.mrb[70].mxu0  ;;  %2769 = vmatpush3.bf16.msra.mxu1 %v3064_v13 }
 0x3d4   : > { %v2458_v2 = vpop.f32.mrb[71].mxu0  ;;  %2770 = vmatprep.subr.bf16.mxu1 %v3065_v54 }
 0x3d5   : > { %v2459_v7 = vadd.f32 %v2458_v2, %v2457_v53 }
 0x3d7   : > { %v1320_v14 = vpack.c.bf16 %v2459_v7, %v2456_v11  ;;  %2771 = vmatpush3.bf16.msra.mxu1 %v3066_v23 }
 0x3d8   : > { %2772 = vmatprep.subr.bf16.mxu1 %v3683_v25 }
 0x3d9   : > { %v2460_v47 = vpop.f32.mrb[72].mxu0  ;;  %1375 = vmatprep.mubr.bf16.mxu1 %v1320_v14 }
 0x3da   : > { %v2461_v49 = vpop.f32.mrb[73].mxu0  ;;  %1376 = vmatmul.mubr.bf16.gmra.mrb[68].mxu1 %v3874_v16 }
 0x3db   : > { %v2462_v3 = vadd.f32 %v2461_v49, %v2460_v47  ;;  %v2463_v15 = vpop.f32.mrb[74].mxu0  ;;  %2773 = vmatpush3.bf16.msra.mxu1 %v3690_v27 }
 0x3dc   : > { %v2464_v6 = vpop.f32.mrb[75].mxu0  ;;  %2774 = vmatprep.subr.bf16.mxu1 %v3693_v28 }
 0x3dd   : > { %v2465_v17 = vadd.f32 %v2464_v6, %v2463_v15 }
 0x3df   : > { %v1321_v18 = vpack.c.bf16 %v2465_v17, %v2462_v3  ;;  %2775 = vmatpush3.bf16.msra.mxu1 %v3698_v30 }
 0x3e0   : > { %2776 = vmatprep.subr.bf16.mxu1 %v3701_v31 }
 0x3e1   : > { %v2466_v19 = vpop.f32.mrb[76].mxu0  ;;  %1383 = vmatprep.mubr.bf16.mxu1 %v1321_v18 }
 0x3e2   : > { %v2467_v25 = vpop.f32.mrb[77].mxu0  ;;  %1384 = vmatmul.mubr.bf16.gmra.mrb[72].mxu1 %v3878_v63 }
 0x3e3   : > { %v2468_v20 = vadd.f32 %v2467_v25, %v2466_v19  ;;  %v2469_v16 = vpop.f32.mrb[78].mxu0  ;;  %2777 = vmatpush3.bf16.msra.mxu1 %v3707_v32 }
 0x3e4   : > { %v2470_v26 = vpop.f32.mrb[79].mxu0  ;;  %2778 = vmatprep.subr.bf16.mxu1 %v3713_v34 }
 0x3e5   : > { %v2471_v27 = vadd.f32 %v2470_v26, %v2469_v16 }
 0x3e7   : > { %v1322_v28 = vpack.c.bf16 %v2471_v27, %v2468_v20  ;;  %2779 = vmatpush3.bf16.msra.mxu1 %v3719_v36 }
 0x3e8   : > { %2780 = vmatprep.subr.bf16.mxu1 %v3781_v51 }
 0x3e9   : > { %v2472_v30 = vpop.f32.mrb[80].mxu0  ;;  %1391 = vmatprep.mubr.bf16.mxu1 %v1322_v28 }
 0x3ea   : > { %v2473_v31 = vpop.f32.mrb[81].mxu0  ;;  %1392 = vmatmul.mubr.bf16.gmra.mrb[76].mxu1 %v3882_v22 }
 0x3eb   : > { %v2474_v29 = vadd.f32 %v2473_v31, %v2472_v30  ;;  %v2475_v63 = vpop.f32.mrb[82].mxu0  ;;  %2781 = vmatpush3.bf16.msra.mxu1 %v3783_v52 }
 0x3ec   : > { %v2476_v33 = vpop.f32.mrb[83].mxu0  ;;  %2782 = vmatprep.subr.bf16.mxu1 %v3793_v55 }
 0x3ed   : > { %v2477_v32 = vadd.f32 %v2476_v33, %v2475_v63 }
 0x3ef   : > { %v1323_v34 = vpack.c.bf16 %v2477_v32, %v2474_v29  ;;  %2783 = vmatpush3.bf16.msra.mxu1 %v3795_v56 }
 0x3f1   : > { %v2478_v35 = vpop.f32.mrb[84].mxu0  ;;  %1399 = vmatprep.mubr.bf16.mxu1 %v1323_v34 }
 0x3f2   : > { %v2479_v36 = vpop.f32.mrb[85].mxu0  ;;  %1400 = vmatmul.mubr.bf16.gmra.mrb[80].mxu1 %v3886_v21 }
 0x3f3   : > { %v2480_v51 = vadd.f32 %v2479_v36, %v2478_v35  ;;  %v2481_v37 = vpop.f32.mrb[86].mxu0 }
 0x3f4   : > { %v2482_v38 = vpop.f32.mrb[87].mxu0 }
 0x3f5   : > { %v2483_v22 = vadd.f32 %v2482_v38, %v2481_v37 }
 0x3f7   : > { %v1324_v39 = vpack.c.bf16 %v2483_v22, %v2480_v51 }
 0x3f9   : > { %v2484_v40 = vpop.f32.mrb[88].mxu0  ;;  %1407 = vmatprep.mubr.bf16.mxu1 %v1324_v39 }
 0x3fa   : > { %v2485_v52 = vpop.f32.mrb[89].mxu0  ;;  %1408 = vmatmul.mubr.bf16.gmra.mrb[84].mxu1 %v3890_v12 }
 0x3fb   : > { %v2486_v55 = vadd.f32 %v2485_v52, %v2484_v40  ;;  %v2487_v41 = vpop.f32.mrb[90].mxu0 }
 0x3fc   : > { %v2488_v42 = vpop.f32.mrb[91].mxu0 }
 0x3fd   : > { %v2489_v43 = vadd.f32 %v2488_v42, %v2487_v41 }
 0x3ff   : > { %v1325_v56 = vpack.c.bf16 %v2489_v43, %v2486_v55 }
 0x401   : > { %v2490_v44 = vpop.f32.mrb[92].mxu0  ;;  %1415 = vmatprep.mubr.bf16.mxu1 %v1325_v56 }
 0x402   : > { %v2491_v45 = vpop.f32.mrb[93].mxu0  ;;  %1416 = vmatmul.mubr.bf16.gmra.mrb[88].mxu1 %v3894_v24 }
 0x403   : > { %v2492_v21 = vadd.f32 %v2491_v45, %v2490_v44  ;;  %v2493_v46 = vpop.f32.mrb[94].mxu0 }
 0x404   : > { %v2494_v58 = vpop.f32.mrb[95].mxu0 }
 0x405   : > { %v2495_v9 = vadd.f32 %v2494_v58, %v2493_v46 }
 0x407   : > { %v1326_v0 = vpack.c.bf16 %v2495_v9, %v2492_v21 }
 0x409   : > { %v2496_v62 = vpop.f32.mrb[96].mxu0  ;;  %1423 = vmatprep.mubr.bf16.mxu1 %v1326_v0 }
 0x40a   : > { %v2497_v5 = vpop.f32.mrb[97].mxu0  ;;  %1424 = vmatmul.mubr.bf16.gmra.mrb[92].mxu1 %v3898_v61 }
 0x40b   : > { %v2498_v12 = vadd.f32 %v2497_v5, %v2496_v62  ;;  %v2499_v11 = vpop.f32.mrb[98].mxu0 }
 0x40c   : > { %v2500_v53 = vpop.f32.mrb[99].mxu0 }
 0x40d   : > { %v2501_v13 = vadd.f32 %v2500_v53, %v2499_v11 }
 0x40f   : > { %v1327_v2 = vpack.c.bf16 %v2501_v13, %v2498_v12 }
 0x411   : > { %v2502_v54 = vpop.f32.mrb[100].mxu0  ;;  %1431 = vmatprep.mubr.bf16.mxu1 %v1327_v2 }
 0x412   : > { %v2503_v7 = vpop.f32.mrb[101].mxu0  ;;  %1432 = vmatmul.mubr.bf16.gmra.mrb[96].mxu1 %v3902_v4 }
 0x413   : > { %v2504_v24 = vadd.f32 %v2503_v7, %v2502_v54  ;;  %v2505_v14 = vpop.f32.mrb[102].mxu0 }
 0x414   : > { %v2506_v23 = vpop.f32.mrb[103].mxu0 }
 0x415   : > { %v2507_v47 = vadd.f32 %v2506_v23, %v2505_v14 }
 0x417   : > { %v1328_v49 = vpack.c.bf16 %v2507_v47, %v2504_v24 }
 0x419   : > { %v2508_v3 = vpop.f32.mrb[104].mxu0  ;;  %1439 = vmatprep.mubr.bf16.mxu1 %v1328_v49 }
 0x41a   : > { %v2509_v15 = vpop.f32.mrb[105].mxu0  ;;  %1440 = vmatmul.mubr.bf16.gmra.mrb[100].mxu1 %v3908_v8 }
 0x41b   : > { %v2510_v61 = vadd.f32 %v2509_v15, %v2508_v3  ;;  %v2511_v6 = vpop.f32.mrb[106].mxu0 }
 0x41c   : > { %v2512_v17 = vpop.f32.mrb[107].mxu0 }
 0x41d   : > { %v2513_v18 = vadd.f32 %v2512_v17, %v2511_v6 }
 0x41f   : > { %v1329_v19 = vpack.c.bf16 %v2513_v18, %v2510_v61 }
 0x421   : > { %v2514_v25 = vpop.f32.mrb[108].mxu0  ;;  %1447 = vmatprep.mubr.bf16.mxu1 %v1329_v19 }
 0x422   : > { %v2515_v20 = vpop.f32.mrb[109].mxu0  ;;  %1448 = vmatmul.mubr.bf16.gmra.mrb[104].mxu1 %v3914_v1 }
 0x423   : > { %v2516_v4 = vadd.f32 %v2515_v20, %v2514_v25  ;;  %v2517_v16 = vpop.f32.mrb[110].mxu0 }
 0x424   : > { %v2518_v26 = vpop.f32.mrb[111].mxu0 }
 0x425   : > { %v2519_v27 = vadd.f32 %v2518_v26, %v2517_v16 }
 0x427   : > { %v1330_v28 = vpack.c.bf16 %v2519_v27, %v2516_v4 }
 0x429   : > { %v2520_v30 = vpop.f32.mrb[112].mxu0  ;;  %1455 = vmatprep.mubr.bf16.mxu1 %v1330_v28 }
 0x42a   : > { %v2521_v31 = vpop.f32.mrb[113].mxu0  ;;  %1456 = vmatmul.mubr.bf16.gmra.mrb[108].mxu1 %v3920_v59 }
 0x42b   : > { %v2522_v8 = vadd.f32 %v2521_v31, %v2520_v30  ;;  %v2523_v29 = vpop.f32.mrb[114].mxu0 }
 0x42c   : > { %v2524_v63 = vpop.f32.mrb[115].mxu0 }
 0x42d   : > { %v2525_v33 = vadd.f32 %v2524_v63, %v2523_v29 }
 0x42f   : > { %v1331_v32 = vpack.c.bf16 %v2525_v33, %v2522_v8 }
 0x431   : > { %v2526_v34 = vpop.f32.mrb[116].mxu0  ;;  %1463 = vmatprep.mubr.bf16.mxu1 %v1331_v32 }
 0x432   : > { %v2527_v35 = vpop.f32.mrb[117].mxu0  ;;  %1464 = vmatmul.mubr.bf16.gmra.mrb[112].mxu1 %v3926_v50 }
 0x433   : > { %v2528_v1 = vadd.f32 %v2527_v35, %v2526_v34  ;;  %v2529_v36 = vpop.f32.mrb[118].mxu0 }
 0x434   : > { %v2530_v51 = vpop.f32.mrb[119].mxu0 }
 0x435   : > { %v2531_v37 = vadd.f32 %v2530_v51, %v2529_v36 }
 0x437   : > { %v1332_v38 = vpack.c.bf16 %v2531_v37, %v2528_v1 }
 0x439   : > { %v2532_v22 = vpop.f32.mrb[120].mxu0  ;;  %1471 = vmatprep.mubr.bf16.mxu1 %v1332_v38 }
 0x43a   : > { %v2533_v39 = vpop.f32.mrb[121].mxu0  ;;  %1472 = vmatmul.mubr.bf16.gmra.mrb[116].mxu1 %v3932_v60 }
 0x43b   : > { %v2534_v59 = vadd.f32 %v2533_v39, %v2532_v22  ;;  %v2535_v40 = vpop.f32.mrb[122].mxu0 }
 0x43c   : > { %v2536_v52 = vpop.f32.mrb[123].mxu0 }
 0x43d   : > { %v2537_v55 = vadd.f32 %v2536_v52, %v2535_v40 }
 0x43f   : > { %v1333_v41 = vpack.c.bf16 %v2537_v55, %v2534_v59 }
 0x441   : > { %v2538_v42 = vpop.f32.mrb[124].mxu0  ;;  %1479 = vmatprep.mubr.bf16.mxu1 %v1333_v41 }
 0x442   : > { %v2539_v43 = vpop.f32.mrb[125].mxu0  ;;  %1480 = vmatmul.mubr.bf16.gmra.mrb[120].mxu1 %v3938_v48 }
 0x443   : > { %v2540_v50 = vadd.f32 %v2539_v43, %v2538_v42  ;;  %v2541_v56 = vpop.f32.mrb[126].mxu0 }
 0x444   : > { %v2542_v44 = vpop.f32.mrb[127].mxu0 }
 0x445   : > { %v2543_v45 = vadd.f32 %v2542_v44, %v2541_v56 }
 0x447   : > { %v1334_v21 = vpack.c.bf16 %v2543_v45, %v2540_v50 }
 0x449   : > { %1487 = vmatprep.mubr.bf16.mxu1 %v1334_v21 }
 0x44a   : > { %1488 = vmatmul.mubr.bf16.gmra.mrb[124].mxu1 %v3944_v57 }
 0x4a5   : > { %v2560_v46 = vpop.f32.mrb[64].mxu1 }
 0x4a6   : > { %v2561_v60 = vpop.f32.mrb[65].mxu1 }
 0x4a7   : > { %v2562_v58 = vadd.f32 %v2561_v60, %v2560_v46  ;;  %v2563_v9 = vpop.f32.mrb[66].mxu1 }
 0x4a8   : > { %v2564_v0 = vpop.f32.mrb[67].mxu1 }
 0x4a9   : > { %v1370_v62 = vadd.f32 %v2562_v58, %v3866_v10  ;;  %v2565_v5 = vadd.f32 %v2564_v0, %v2563_v9 }
 0x4ab   : > { %v1373_v12 = vadd.f32 %v2565_v5, %v3866_v10  ;;  %v1496_v11 = vmax.f32 %v1370_v62, 0.0 }
 0x4ad   : > { %v1497_v48 = vmax.f32 %v1373_v12, 0.0  ;;  %v2566_v53 = vpop.f32.mrb[68].mxu1 }
 0x4ae   : > { %v2567_v13 = vpop.f32.mrb[69].mxu1 }
 0x4af   : > { %v4010_v2 = vpack.c.bf16 %v1497_v48, %v1496_v11  ;;  %v2568_v54 = vadd.f32 %v2567_v13, %v2566_v53  ;;  %v2569_v7 = vpop.f32.mrb[70].mxu1 }
 0x4b0   : > { %v2570_v24 = vpop.f32.mrb[71].mxu1 }
 0x4b1   : > { %v1378_v57 = vadd.f32 %v2568_v54, %v3866_v10  ;;  %v2571_v14 = vadd.f32 %v2570_v24, %v2569_v7 }
 0x4b3   : > { %v1381_v23 = vadd.f32 %v2571_v14, %v3866_v10  ;;  %v1498_v47 = vmax.f32 %v1378_v57, 0.0 }
 0x4b5   : > { %v1499_v49 = vmax.f32 %v1381_v23, 0.0  ;;  %v2572_v3 = vpop.f32.mrb[72].mxu1 }
 0x4b6   : > { %v2573_v15 = vpop.f32.mrb[73].mxu1 }
 0x4b7   : > { %v4014_v61 = vpack.c.bf16 %v1499_v49, %v1498_v47  ;;  %v2574_v6 = vadd.f32 %v2573_v15, %v2572_v3  ;;  %v2575_v17 = vpop.f32.mrb[74].mxu1 }
 0x4b8   : > { %v2576_v18 = vpop.f32.mrb[75].mxu1 }
 0x4b9   : > { %v1386_v19 = vadd.f32 %v2574_v6, %v3866_v10  ;;  %v2577_v25 = vadd.f32 %v2576_v18, %v2575_v17 }
 0x4bb   : > { %v1389_v20 = vadd.f32 %v2577_v25, %v3866_v10  ;;  %v1500_v4 = vmax.f32 %v1386_v19, 0.0 }
 0x4bd   : > { %v1501_v16 = vmax.f32 %v1389_v20, 0.0  ;;  %v2578_v26 = vpop.f32.mrb[76].mxu1 }
 0x4be   : > { %v2579_v27 = vpop.f32.mrb[77].mxu1 }
 0x4bf   : > { %v4018_v28 = vpack.c.bf16 %v1501_v16, %v1500_v4  ;;  %v2580_v30 = vadd.f32 %v2579_v27, %v2578_v26  ;;  %v2581_v31 = vpop.f32.mrb[78].mxu1 }
 0x4c0   : > { %v2582_v8 = vpop.f32.mrb[79].mxu1 }
 0x4c1   : > { %v1394_v29 = vadd.f32 %v2580_v30, %v3866_v10  ;;  %v2583_v63 = vadd.f32 %v2582_v8, %v2581_v31 }
 0x4c3   : > { %v1397_v33 = vadd.f32 %v2583_v63, %v3866_v10  ;;  %v1502_v32 = vmax.f32 %v1394_v29, 0.0 }
 0x4c5   : > { %v1503_v34 = vmax.f32 %v1397_v33, 0.0  ;;  %v2584_v35 = vpop.f32.mrb[80].mxu1 }
 0x4c6   : > { %v2585_v1 = vpop.f32.mrb[81].mxu1 }
 0x4c7   : > { %v4022_v36 = vpack.c.bf16 %v1503_v34, %v1502_v32  ;;  %v2586_v51 = vadd.f32 %v2585_v1, %v2584_v35  ;;  %v2587_v37 = vpop.f32.mrb[82].mxu1 }
 0x4c8   : > { %v2588_v38 = vpop.f32.mrb[83].mxu1 }
 0x4c9   : > { %v1402_v22 = vadd.f32 %v2586_v51, %v3866_v10  ;;  %v2589_v39 = vadd.f32 %v2588_v38, %v2587_v37 }
 0x4cb   : > { %v1405_v59 = vadd.f32 %v2589_v39, %v3866_v10  ;;  %v1504_v40 = vmax.f32 %v1402_v22, 0.0 }
 0x4cd   : > { %v1505_v52 = vmax.f32 %v1405_v59, 0.0  ;;  %v2590_v55 = vpop.f32.mrb[84].mxu1 }
 0x4ce   : > { %v2591_v41 = vpop.f32.mrb[85].mxu1 }
 0x4cf   : > { %v4026_v42 = vpack.c.bf16 %v1505_v52, %v1504_v40  ;;  %v2592_v43 = vadd.f32 %v2591_v41, %v2590_v55  ;;  %v2593_v50 = vpop.f32.mrb[86].mxu1 }
 0x4d0   : > { %v2594_v56 = vpop.f32.mrb[87].mxu1 }
 0x4d1   : > { %v1410_v44 = vadd.f32 %v2592_v43, %v3866_v10  ;;  %v2595_v45 = vadd.f32 %v2594_v56, %v2593_v50 }
 0x4d3   : > { %v1413_v21 = vadd.f32 %v2595_v45, %v3866_v10  ;;  %v1506_v46 = vmax.f32 %v1410_v44, 0.0 }
 0x4d5   : > { %v1507_v60 = vmax.f32 %v1413_v21, 0.0  ;;  %v2596_v58 = vpop.f32.mrb[88].mxu1 }
 0x4d6   : > { %v2597_v9 = vpop.f32.mrb[89].mxu1 }
 0x4d7   : > { %v4030_v0 = vpack.c.bf16 %v1507_v60, %v1506_v46  ;;  %v2598_v62 = vadd.f32 %v2597_v9, %v2596_v58  ;;  %v2599_v5 = vpop.f32.mrb[90].mxu1 }
 0x4d8   : > { %v2600_v12 = vpop.f32.mrb[91].mxu1 }
 0x4d9   : > { %v1418_v11 = vadd.f32 %v2598_v62, %v3866_v10  ;;  %v2601_v48 = vadd.f32 %v2600_v12, %v2599_v5  ;;  %v4059_v5 = vld [vmem:[%s4251_s4] ss:$0 sm:$0xff] }
 0x4db   : > { %v1421_v53 = vadd.f32 %v2601_v48, %v3866_v10  ;;  %v1508_v13 = vmax.f32 %v1418_v11, 0.0 }
 0x4dd   : > { %v1509_v54 = vmax.f32 %v1421_v53, 0.0  ;;  %v2602_v7 = vpop.f32.mrb[92].mxu1 }
 0x4de   : > { %v2603_v24 = vpop.f32.mrb[93].mxu1 }
 0x4df   : > { %v4034_v57 = vpack.c.bf16 %v1509_v54, %v1508_v13  ;;  %v2604_v14 = vadd.f32 %v2603_v24, %v2602_v7  ;;  %v2605_v23 = vpop.f32.mrb[94].mxu1 }
 0x4e0   : > { %v2606_v47 = vpop.f32.mrb[95].mxu1 }
 0x4e1   : > { %v1426_v49 = vadd.f32 %v2604_v14, %v3866_v10  ;;  %v2607_v3 = vadd.f32 %v2606_v47, %v2605_v23 }
 0x4e3   : > { %v1429_v15 = vadd.f32 %v2607_v3, %v3866_v10  ;;  %v1510_v6 = vmax.f32 %v1426_v49, 0.0 }
 0x4e5   : > { %v1511_v17 = vmax.f32 %v1429_v15, 0.0  ;;  %v2608_v18 = vpop.f32.mrb[96].mxu1 }
 0x4e6   : > { %v2609_v19 = vpop.f32.mrb[97].mxu1 }
 0x4e7   : > { %v4038_v25 = vpack.c.bf16 %v1511_v17, %v1510_v6  ;;  %v2610_v20 = vadd.f32 %v2609_v19, %v2608_v18  ;;  %v2611_v4 = vpop.f32.mrb[98].mxu1 }
 0x4e8   : > { %v2612_v16 = vpop.f32.mrb[99].mxu1 }
 0x4e9   : > { %v1434_v26 = vadd.f32 %v2610_v20, %v3866_v10  ;;  %v2613_v27 = vadd.f32 %v2612_v16, %v2611_v4 }
 0x4eb   : > { %v1437_v30 = vadd.f32 %v2613_v27, %v3866_v10  ;;  %v1512_v31 = vmax.f32 %v1434_v26, 0.0 }
 0x4ed   : > { %v1513_v8 = vmax.f32 %v1437_v30, 0.0  ;;  %v2614_v29 = vpop.f32.mrb[100].mxu1 }
 0x4ee   : > { %v2615_v63 = vpop.f32.mrb[101].mxu1 }
 0x4ef   : > { %v2616_v33 = vadd.f32 %v2615_v63, %v2614_v29  ;;  %v2617_v32 = vpop.f32.mrb[102].mxu1  ;;  %v4042_v34 = vpack.c.bf16 %v1513_v8, %v1512_v31 }
 0x4f0   : > { %v2618_v35 = vpop.f32.mrb[103].mxu1 }
 0x4f1   : > { %v1442_v1 = vadd.f32 %v2616_v33, %v3866_v10  ;;  %v2619_v51 = vadd.f32 %v2618_v35, %v2617_v32  ;;  %2656 = vmatprep.subr.bf16.mxu0 %v4042_v34 }
 0x4f2   : > { %2657 = vmatpush3.bf16.msra.mxu0 %v4010_v2 }
 0x4f3   : > { %v1445_v37 = vadd.f32 %v2619_v51, %v3866_v10  ;;  %v1514_v38 = vmax.f32 %v1442_v1, 0.0 }
 0x4f5   : > { %v1515_v22 = vmax.f32 %v1445_v37, 0.0  ;;  %v2620_v39 = vpop.f32.mrb[104].mxu1 }
 0x4f6   : > { %v2621_v59 = vpop.f32.mrb[105].mxu1 }
 0x4f7   : > { %v2622_v40 = vadd.f32 %v2621_v59, %v2620_v39  ;;  %v2623_v52 = vpop.f32.mrb[106].mxu1  ;;  %v4048_v55 = vpack.c.bf16 %v1515_v22, %v1514_v38 }
 0x4f8   : > { %v2624_v41 = vpop.f32.mrb[107].mxu1 }
 0x4f9   : > { %v1450_v43 = vadd.f32 %v2622_v40, %v3866_v10  ;;  %v2625_v50 = vadd.f32 %v2624_v41, %v2623_v52  ;;  %2658 = vmatprep.subr.bf16.mxu0 %v4048_v55 }
 0x4fa   : > { %2659 = vmatpush3.bf16.msra.mxu0 %v4014_v61 }
 0x4fb   : > { %v1453_v56 = vadd.f32 %v2625_v50, %v3866_v10  ;;  %v1516_v44 = vmax.f32 %v1450_v43, 0.0 }
 0x4fd   : > { %v1517_v45 = vmax.f32 %v1453_v56, 0.0  ;;  %v2626_v21 = vpop.f32.mrb[108].mxu1 }
 0x4fe   : > { %v2627_v46 = vpop.f32.mrb[109].mxu1 }
 0x4ff   : > { %v2628_v60 = vadd.f32 %v2627_v46, %v2626_v21  ;;  %v2629_v58 = vpop.f32.mrb[110].mxu1  ;;  %v4054_v9 = vpack.c.bf16 %v1517_v45, %v1516_v44 }
 0x500   : > { %v2630_v62 = vpop.f32.mrb[111].mxu1 }
 0x501   : > { %v1458_v12 = vadd.f32 %v4059_v5, %v2628_v60  ;;  %v2631_v11 = vadd.f32 %v2630_v62, %v2629_v58  ;;  %2660 = vmatprep.subr.bf16.mxu0 %v4054_v9  ;;  %v3068_v58 = vld [vmem:[%s3567_s13] ss:$8 sps:$4 sm:$0xff]   ;;  %v3069_v62 = vld [vmem:[%s3567_s13 + $0x14] ss:$8 sps:$4 sm:$0xff]  }
 0x502   : > { %2661 = vmatpush3.bf16.msra.mxu0 %v4018_v28 }
 0x503   : > { %v1461_v10 = vadd.f32 %v4059_v5, %v2631_v11  ;;  %v1518_v48 = vmax.f32 %v1458_v12, 0.0  ;;  %v3070_v12 = vld [vmem:[%s3567_s13 + $0x10] ss:$8 sps:$4 sm:$0xff]   ;;  %v3071_v11 = vld [vmem:[%s3567_s13 + $0x24] ss:$8 sps:$4 sm:$0xff]  }
 0x505   : > { %v1519_v53 = vmax.f32 %v1461_v10, 0.0  ;;  %v2632_v13 = vpop.f32.mrb[112].mxu1  ;;  %v3072_v10 = vld [vmem:[%s3567_s13 + $0x20] ss:$8 sps:$4 sm:$0xff]  }
 0x506   : > { %v2633_v54 = vpop.f32.mrb[113].mxu1 }
 0x507   : > { %v2634_v7 = vadd.f32 %v2633_v54, %v2632_v13  ;;  %v2635_v24 = vpop.f32.mrb[114].mxu1  ;;  %v4065_v14 = vpack.c.bf16 %v1519_v53, %v1518_v48  ;;  %v3073_v48 = vld [vmem:[%s3567_s13 + $0x34] ss:$8 sps:$4 sm:$0xff]   ;;  %v3074_v53 = vld [vmem:[%s3567_s13 + $0x30] ss:$8 sps:$4 sm:$0xff]  }
 0x508   : > { %v2636_v23 = vpop.f32.mrb[115].mxu1  ;;  %v3075_v13 = vld [vmem:[%s3567_s13 + $0x44] ss:$8 sps:$4 sm:$0xff]   ;;  %v3076_v54 = vld [vmem:[%s3567_s13 + $0x40] ss:$8 sps:$4 sm:$0xff]  }
 0x509   : > { %v1466_v47 = vadd.f32 %v4059_v5, %v2634_v7  ;;  %v2637_v49 = vadd.f32 %v2636_v23, %v2635_v24  ;;  %2662 = vmatprep.subr.bf16.mxu0 %v4065_v14  ;;  %v3077_v7 = vld [vmem:[%s3567_s13 + $0x54] ss:$8 sps:$4 sm:$0xff]   ;;  %v3078_v24 = vld [vmem:[%s3567_s13 + $0x50] ss:$8 sps:$4 sm:$0xff]   ;;  %v3079_v23 = vld [vmem:[%s3567_s13 + $0x64] ss:$8 sps:$4 sm:$0xff]  }
 0x50a   : > { %2663 = vmatpush3.bf16.msra.mxu0 %v4022_v36 }
 0x50b   : > { %v1469_v3 = vadd.f32 %v4059_v5, %v2637_v49  ;;  %v1520_v15 = vmax.f32 %v1466_v47, 0.0  ;;  %v3080_v47 = vld [vmem:[%s3567_s13 + $0x60] ss:$8 sps:$4 sm:$0xff]   ;;  %v3081_v49 = vld [vmem:[%s3567_s13 + $0x74] ss:$8 sps:$4 sm:$0xff]  }
 0x50d   : > { %v1521_v6 = vmax.f32 %v1469_v3, 0.0  ;;  %v2638_v17 = vpop.f32.mrb[116].mxu1  ;;  %v3082_v3 = vld [vmem:[%s3567_s13 + $0x70] ss:$8 sps:$4 sm:$0xff]  }
 0x50e   : > { %v2639_v18 = vpop.f32.mrb[117].mxu1 }
 0x50f   : > { %v2640_v19 = vadd.f32 %v2639_v18, %v2638_v17  ;;  %v2641_v20 = vpop.f32.mrb[118].mxu1  ;;  %v4071_v4 = vpack.c.bf16 %v1521_v6, %v1520_v15  ;;  %v3083_v15 = vld [vmem:[%s3567_s13 + $0x84] ss:$8 sps:$4 sm:$0xff]   ;;  %v3084_v6 = vld [vmem:[%s3567_s13 + $0x80] ss:$8 sps:$4 sm:$0xff]  }
 0x510   : > { %v2642_v16 = vpop.f32.mrb[119].mxu1  ;;  %v3085_v17 = vld [vmem:[%s3567_s13 + $0x94] ss:$8 sps:$4 sm:$0xff]   ;;  %v3086_v18 = vld [vmem:[%s3567_s13 + $0x90] ss:$8 sps:$4 sm:$0xff]  }
 0x511   : > { %v1474_v26 = vadd.f32 %v4059_v5, %v2640_v19  ;;  %v2643_v27 = vadd.f32 %v2642_v16, %v2641_v20  ;;  %2664 = vmatprep.subr.bf16.mxu0 %v4071_v4  ;;  %v3087_v19 = vld [vmem:[%s3567_s13 + $0xa4] ss:$8 sps:$4 sm:$0xff]   ;;  %v3088_v20 = vld [vmem:[%s3567_s13 + $0xa0] ss:$8 sps:$4 sm:$0xff]   ;;  %v3089_v16 = vld [vmem:[%s3567_s13 + $0xb4] ss:$8 sps:$4 sm:$0xff]  }
 0x512   : > { %2665 = vmatpush3.bf16.msra.mxu0 %v4026_v42 }
 0x513   : > { %v1477_v30 = vadd.f32 %v4059_v5, %v2643_v27  ;;  %v1522_v31 = vmax.f32 %v1474_v26, 0.0  ;;  %v3090_v26 = vld [vmem:[%s3567_s13 + $0xb0] ss:$8 sps:$4 sm:$0xff]   ;;  %v3091_v27 = vld [vmem:[%s3567_s13 + $0xc4] ss:$8 sps:$4 sm:$0xff]  }
 0x515   : > { %v1523_v8 = vmax.f32 %v1477_v30, 0.0  ;;  %v2644_v29 = vpop.f32.mrb[120].mxu1  ;;  %v3092_v30 = vld [vmem:[%s3567_s13 + $0xc0] ss:$8 sps:$4 sm:$0xff]  }
 0x516   : > { %v2645_v63 = vpop.f32.mrb[121].mxu1 }
 0x517   : > { %v2646_v33 = vadd.f32 %v2645_v63, %v2644_v29  ;;  %v2647_v32 = vpop.f32.mrb[122].mxu1  ;;  %v4077_v35 = vpack.c.bf16 %v1523_v8, %v1522_v31  ;;  %v3093_v31 = vld [vmem:[%s3567_s13 + $0xd4] ss:$8 sps:$4 sm:$0xff]   ;;  %v3094_v8 = vld [vmem:[%s3567_s13 + $0xd0] ss:$8 sps:$4 sm:$0xff]  }
 0x518   : > { %v2648_v1 = vpop.f32.mrb[123].mxu1  ;;  %v3095_v29 = vld [vmem:[%s3567_s13 + $0xe4] ss:$8 sps:$4 sm:$0xff]   ;;  %v3096_v63 = vld [vmem:[%s3567_s13 + $0xe0] ss:$8 sps:$4 sm:$0xff]  }
 0x519   : > { %v1482_v51 = vadd.f32 %v4059_v5, %v2646_v33  ;;  %v2649_v37 = vadd.f32 %v2648_v1, %v2647_v32  ;;  %2666 = vmatprep.subr.bf16.mxu0 %v4077_v35  ;;  %v3097_v33 = vld [vmem:[%s3567_s13 + $0xf4] ss:$8 sps:$4 sm:$0xff]   ;;  %v3098_v32 = vld [vmem:[%s3567_s13 + $0xf0] ss:$8 sps:$4 sm:$0xff]   ;;  %s3219_s13 = sshll.u32 %s3303_s22, 4  ;;  %s3220_s13 = int_to_ptr.vmem [resolvable:$false] %s3219_s13 }
 0x51a   : > { %2667 = vmatpush3.bf16.msra.mxu0 %v4030_v0  ;;  %s3221_s2 = scalar_lea.vmem %s3220_s13, 512  ;;  %p3222_p4 = scmp.lt.s32.totalorder %s4198_s12, %s3220_s13 }
 0x51b   : > { %v1485_v38 = vadd.f32 %v4059_v5, %v2649_v37  ;;  %v1524_v22 = vmax.f32 %v1482_v51, 0.0  ;;  %p3223_p7 = scmp.lt.s32.totalorder %s3221_s2, %s3215_s16 }
 0x51d   : > { %v1525_v39 = vmax.f32 %v1485_v38, 0.0  ;;  %v2650_v59 = vpop.f32.mrb[124].mxu1  ;;  %p3224_p3 = por %p3223_p7, %p3222_p4 }
 0x51e   : > { %v2651_v40 = vpop.f32.mrb[125].mxu1 }
 0x51f   : > { %v2652_v52 = vadd.f32 %v2651_v40, %v2650_v59  ;;  %v2653_v41 = vpop.f32.mrb[126].mxu1  ;;  %v4083_v43 = vpack.c.bf16 %v1525_v39, %v1524_v22  ;;  %p3225_p5 = pnand %p3224_p3, %p3218_p10 }
 0x520   : > { %v2654_v50 = vpop.f32.mrb[127].mxu1 }
 0x521   : > { %v1490_v56 = vadd.f32 %v4059_v5, %v2652_v52  ;;  %v2655_v44 = vadd.f32 %v2654_v50, %v2653_v41  ;;  %2668 = vmatprep.subr.bf16.mxu0 %v4083_v43 }
 0x522   : > { %2669 = vmatpush3.bf16.msra.mxu0 %v4034_v57 }
 0x523   : > { %v1493_v45 = vadd.f32 %v4059_v5, %v2655_v44  ;;  %v1526_v21 = vmax.f32 %v1490_v56, 0.0 }
 0x525   : > { %v1527_v46 = vmax.f32 %v1493_v45, 0.0 }
 0x527   : > { %v4089_v60 = vpack.c.bf16 %v1527_v46, %v1526_v21 }
 0x529   : > { %2670 = vmatprep.subr.bf16.mxu0 %v4089_v60 }
 0x52a   : > { %2671 = vmatpush3.bf16.msra.mxu0 %v4038_v25 }
 0x52d   : > { %1577 = vmatmul.mubr.bf16.vlgmr.msra.gmra.mrb[128].mxu0 %v3068_v58 }
 0x52e   : > { %1584 = vmatprep.mubr.bf16.mxu0 %v3069_v62 }
 0x535   : > { %1585 = vmatmul.mubr.bf16.gmra.mrb[132].mxu0 %v3070_v12 }
 0x536   : > { %1592 = vmatprep.mubr.bf16.mxu0 %v3071_v11 }
 0x53d   : > { %1593 = vmatmul.mubr.bf16.gmra.mrb[136].mxu0 %v3072_v10 }
 0x53e   : > { %1600 = vmatprep.mubr.bf16.mxu0 %v3073_v48 }
 0x545   : > { %1601 = vmatmul.mubr.bf16.gmra.mrb[140].mxu0 %v3074_v53 }
 0x546   : > { %1608 = vmatprep.mubr.bf16.mxu0 %v3075_v13 }
 0x54d   : > { %1609 = vmatmul.mubr.bf16.gmra.mrb[144].mxu0 %v3076_v54 }
 0x54e   : > { %1616 = vmatprep.mubr.bf16.mxu0 %v3077_v7 }
 0x555   : > { %1617 = vmatmul.mubr.bf16.gmra.mrb[148].mxu0 %v3078_v24 }
 0x556   : > { %1624 = vmatprep.mubr.bf16.mxu0 %v3079_v23 }
 0x55d   : > { %1625 = vmatmul.mubr.bf16.gmra.mrb[152].mxu0 %v3080_v47 }
 0x55e   : > { %1632 = vmatprep.mubr.bf16.mxu0 %v3081_v49 }
 0x565   : > { %1633 = vmatmul.mubr.bf16.gmra.mrb[156].mxu0 %v3082_v3 }
 0x566   : > { %1640 = vmatprep.mubr.bf16.mxu0 %v3083_v15 }
 0x56d   : > { %1641 = vmatmul.mubr.bf16.gmra.mrb[160].mxu0 %v3084_v6 }
 0x56e   : > { %1648 = vmatprep.mubr.bf16.mxu0 %v3085_v17 }
 0x575   : > { %1649 = vmatmul.mubr.bf16.gmra.mrb[164].mxu0 %v3086_v18 }
 0x576   : > { %1656 = vmatprep.mubr.bf16.mxu0 %v3087_v19 }
 0x57d   : > { %1657 = vmatmul.mubr.bf16.gmra.mrb[168].mxu0 %v3088_v20 }
 0x57e   : > { %1664 = vmatprep.mubr.bf16.mxu0 %v3089_v16 }
 0x585   : > { %1665 = vmatmul.mubr.bf16.gmra.mrb[172].mxu0 %v3090_v26 }
 0x586   : > { %1672 = vmatprep.mubr.bf16.mxu0 %v3091_v27 }
 0x58d   : > { %1673 = vmatmul.mubr.bf16.gmra.mrb[176].mxu0 %v3092_v30 }
 0x58e   : > { %1680 = vmatprep.mubr.bf16.mxu0 %v3093_v31 }
 0x595   : > { %1681 = vmatmul.mubr.bf16.gmra.mrb[180].mxu0 %v3094_v8 }
 0x596   : > { %1688 = vmatprep.mubr.bf16.mxu0 %v3095_v29 }
 0x59d   : > { %1689 = vmatmul.mubr.bf16.gmra.mrb[184].mxu0 %v3096_v63 }
 0x59e   : > { %1696 = vmatprep.mubr.bf16.mxu0 %v3097_v33 }
 0x5a5   : > { %1697 = vmatmul.mubr.bf16.gmra.mrb[188].mxu0 %v3098_v32 }
 0x600   : > { %v2672_v1 = vpop.f32.mrb[128].mxu0 }
 0x601   : > { %v2673_v51 = vpop.f32.mrb[129].mxu0 }
 0x602   : > { %v2674_v37 = vadd.f32 %v2673_v51, %v2672_v1  ;;  %v2675_v38 = vpop.f32.mrb[130].mxu0 }
 0x603   : > { %v2676_v22 = vpop.f32.mrb[131].mxu0 }
 0x604   : > { %v2677_v39 = vadd.f32 %v2676_v22, %v2675_v38 }
 0x606   : > { %v1705_v59 = vpack.c.bf16 %v2677_v39, %v2674_v37 }
 0x608   : > { %v2678_v40 = vpop.f32.mrb[132].mxu0  ;;  %1753 = vmatprep.mubr.bf16.mxu1 %v1705_v59 }
 0x609   : > { %v2679_v52 = vpop.f32.mrb[133].mxu0  ;;  %1754 = vmatmul.mubr.bf16.vlgmr.msra.gmra.mrb[128].mxu1 %v4010_v2 }
 0x60a   : > { %v2680_v41 = vadd.f32 %v2679_v52, %v2678_v40  ;;  %v2681_v50 = vpop.f32.mrb[134].mxu0 }
 0x60b   : > { %v2682_v56 = vpop.f32.mrb[135].mxu0 }
 0x60c   : > { %v2683_v44 = vadd.f32 %v2682_v56, %v2681_v50 }
 0x60e   : > { %v1706_v45 = vpack.c.bf16 %v2683_v44, %v2680_v41 }
 0x610   : > { %v2684_v21 = vpop.f32.mrb[136].mxu0  ;;  %1761 = vmatprep.mubr.bf16.mxu1 %v1706_v45 }
 0x611   : > { %v2685_v46 = vpop.f32.mrb[137].mxu0  ;;  %1762 = vmatmul.mubr.bf16.gmra.mrb[132].mxu1 %v4014_v61 }
 0x612   : > { %v2686_v58 = vadd.f32 %v2685_v46, %v2684_v21  ;;  %v2687_v62 = vpop.f32.mrb[138].mxu0 }
 0x613   : > { %v2688_v12 = vpop.f32.mrb[139].mxu0 }
 0x614   : > { %v2689_v11 = vadd.f32 %v2688_v12, %v2687_v62 }
 0x616   : > { %v1707_v10 = vpack.c.bf16 %v2689_v11, %v2686_v58 }
 0x618   : > { %v2690_v48 = vpop.f32.mrb[140].mxu0  ;;  %1769 = vmatprep.mubr.bf16.mxu1 %v1707_v10 }
 0x619   : > { %v2691_v53 = vpop.f32.mrb[141].mxu0  ;;  %1770 = vmatmul.mubr.bf16.gmra.mrb[136].mxu1 %v4018_v28 }
 0x61a   : > { %v2692_v2 = vadd.f32 %v2691_v53, %v2690_v48  ;;  %v2693_v13 = vpop.f32.mrb[142].mxu0 }
 0x61b   : > { %v2694_v54 = vpop.f32.mrb[143].mxu0 }
 0x61c   : > { %v2695_v7 = vadd.f32 %v2694_v54, %v2693_v13 }
 0x61e   : > { %v1708_v24 = vpack.c.bf16 %v2695_v7, %v2692_v2 }
 0x620   : > { %v2696_v23 = vpop.f32.mrb[144].mxu0  ;;  %1777 = vmatprep.mubr.bf16.mxu1 %v1708_v24 }
 0x621   : > { %v2697_v47 = vpop.f32.mrb[145].mxu0  ;;  %1778 = vmatmul.mubr.bf16.gmra.mrb[140].mxu1 %v4022_v36 }
 0x622   : > { %v2698_v61 = vadd.f32 %v2697_v47, %v2696_v23  ;;  %v2699_v49 = vpop.f32.mrb[146].mxu0 }
 0x623   : > { %v2700_v3 = vpop.f32.mrb[147].mxu0 }
 0x624   : > { %v2701_v15 = vadd.f32 %v2700_v3, %v2699_v49 }
 0x626   : > { %v1709_v6 = vpack.c.bf16 %v2701_v15, %v2698_v61 }
 0x628   : > { %v2702_v17 = vpop.f32.mrb[148].mxu0  ;;  %1785 = vmatprep.mubr.bf16.mxu1 %v1709_v6 }
 0x629   : > { %v2703_v18 = vpop.f32.mrb[149].mxu0  ;;  %1786 = vmatmul.mubr.bf16.gmra.mrb[144].mxu1 %v4026_v42 }
 0x62a   : > { %v2704_v28 = vadd.f32 %v2703_v18, %v2702_v17  ;;  %v2705_v19 = vpop.f32.mrb[150].mxu0 }
 0x62b   : > { %v2706_v20 = vpop.f32.mrb[151].mxu0 }
 0x62c   : > { %v2707_v16 = vadd.f32 %v2706_v20, %v2705_v19 }
 0x62e   : > { %v1710_v26 = vpack.c.bf16 %v2707_v16, %v2704_v28 }
 0x630   : > { %v2708_v27 = vpop.f32.mrb[152].mxu0  ;;  %1793 = vmatprep.mubr.bf16.mxu1 %v1710_v26 }
 0x631   : > { %v2709_v30 = vpop.f32.mrb[153].mxu0  ;;  %1794 = vmatmul.mubr.bf16.gmra.mrb[148].mxu1 %v4030_v0 }
 0x632   : > { %v2710_v36 = vadd.f32 %v2709_v30, %v2708_v27  ;;  %v2711_v31 = vpop.f32.mrb[154].mxu0 }
 0x633   : > { %v2712_v8 = vpop.f32.mrb[155].mxu0 }
 0x634   : > { %v2713_v29 = vadd.f32 %v2712_v8, %v2711_v31 }
 0x636   : > { %v1711_v63 = vpack.c.bf16 %v2713_v29, %v2710_v36 }
 0x638   : > { %v2714_v33 = vpop.f32.mrb[156].mxu0  ;;  %1801 = vmatprep.mubr.bf16.mxu1 %v1711_v63 }
 0x639   : > { %v2715_v32 = vpop.f32.mrb[157].mxu0  ;;  %1802 = vmatmul.mubr.bf16.gmra.mrb[152].mxu1 %v4034_v57 }
 0x63a   : > { %v2716_v42 = vadd.f32 %v2715_v32, %v2714_v33  ;;  %v2717_v1 = vpop.f32.mrb[158].mxu0 }
 0x63b   : > { %v2718_v51 = vpop.f32.mrb[159].mxu0 }
 0x63c   : > { %v2719_v37 = vadd.f32 %v2718_v51, %v2717_v1 }
 0x63e   : > { %v1712_v38 = vpack.c.bf16 %v2719_v37, %v2716_v42 }
 0x640   : > { %v2720_v22 = vpop.f32.mrb[160].mxu0  ;;  %1809 = vmatprep.mubr.bf16.mxu1 %v1712_v38 }
 0x641   : > { %v2721_v39 = vpop.f32.mrb[161].mxu0  ;;  %1810 = vmatmul.mubr.bf16.gmra.mrb[156].mxu1 %v4038_v25 }
 0x642   : > { %v2722_v0 = vadd.f32 %v2721_v39, %v2720_v22  ;;  %v2723_v59 = vpop.f32.mrb[162].mxu0 }
 0x643   : > { %v2724_v40 = vpop.f32.mrb[163].mxu0 }
 0x644   : > { %v2725_v52 = vadd.f32 %v2724_v40, %v2723_v59 }
 0x646   : > { %v1713_v41 = vpack.c.bf16 %v2725_v52, %v2722_v0  ;;  %v3062_v0 = vld [vmem:[#allocation7 + $0x4] ss:$8 sps:$4 sm:$0xff]  }
 0x647   : > { %1974 = vmatprep.mubr.bf16.mxu0 %v3062_v0 }
 0x648   : > { %v2726_v50 = vpop.f32.mrb[164].mxu0  ;;  %1817 = vmatprep.mubr.bf16.mxu1 %v1713_v41 }
 0x649   : > { %v2727_v56 = vpop.f32.mrb[165].mxu0  ;;  %1818 = vmatmul.mubr.bf16.gmra.mrb[160].mxu1 %v4042_v34 }
 0x64a   : > { %v2728_v57 = vadd.f32 %v2727_v56, %v2726_v50  ;;  %v2729_v44 = vpop.f32.mrb[166].mxu0 }
 0x64b   : > { %v2730_v45 = vpop.f32.mrb[167].mxu0 }
 0x64c   : > { %v2731_v21 = vadd.f32 %v2730_v45, %v2729_v44 }
 0x64e   : > { %v1714_v46 = vpack.c.bf16 %v2731_v21, %v2728_v57 }
 0x650   : > { %v2732_v58 = vpop.f32.mrb[168].mxu0  ;;  %1825 = vmatprep.mubr.bf16.mxu1 %v1714_v46 }
 0x651   : > { %v2733_v62 = vpop.f32.mrb[169].mxu0  ;;  %1826 = vmatmul.mubr.bf16.gmra.mrb[164].mxu1 %v4048_v55 }
 0x652   : > { %v2734_v25 = vadd.f32 %v2733_v62, %v2732_v58  ;;  %v2735_v12 = vpop.f32.mrb[170].mxu0 }
 0x653   : > { %v2736_v11 = vpop.f32.mrb[171].mxu0 }
 0x654   : > { %v2737_v10 = vadd.f32 %v2736_v11, %v2735_v12 }
 0x656   : > { %v1715_v48 = vpack.c.bf16 %v2737_v10, %v2734_v25 }
 0x658   : > { %v2738_v53 = vpop.f32.mrb[172].mxu0  ;;  %1833 = vmatprep.mubr.bf16.mxu1 %v1715_v48 }
 0x659   : > { %v2739_v2 = vpop.f32.mrb[173].mxu0  ;;  %1834 = vmatmul.mubr.bf16.gmra.mrb[168].mxu1 %v4054_v9 }
 0x65a   : > { %v2740_v34 = vadd.f32 %v2739_v2, %v2738_v53  ;;  %v2741_v13 = vpop.f32.mrb[174].mxu0 }
 0x65b   : > { %v2742_v54 = vpop.f32.mrb[175].mxu0 }
 0x65c   : > { %v2743_v7 = vadd.f32 %v2742_v54, %v2741_v13 }
 0x65e   : > { %v1716_v24 = vpack.c.bf16 %v2743_v7, %v2740_v34 }
 0x660   : > { %v2744_v23 = vpop.f32.mrb[176].mxu0  ;;  %1841 = vmatprep.mubr.bf16.mxu1 %v1716_v24 }
 0x661   : > { %v2745_v47 = vpop.f32.mrb[177].mxu0  ;;  %1842 = vmatmul.mubr.bf16.gmra.mrb[172].mxu1 %v4065_v14 }
 0x662   : > { %v2746_v55 = vadd.f32 %v2745_v47, %v2744_v23  ;;  %v2747_v61 = vpop.f32.mrb[178].mxu0 }
 0x663   : > { %v2748_v49 = vpop.f32.mrb[179].mxu0 }
 0x664   : > { %v2749_v3 = vadd.f32 %v2748_v49, %v2747_v61 }
 0x666   : > { %v1717_v15 = vpack.c.bf16 %v2749_v3, %v2746_v55 }
 0x668   : > { %v2750_v6 = vpop.f32.mrb[180].mxu0  ;;  %1849 = vmatprep.mubr.bf16.mxu1 %v1717_v15 }
 0x669   : > { %v2751_v17 = vpop.f32.mrb[181].mxu0  ;;  %1850 = vmatmul.mubr.bf16.gmra.mrb[176].mxu1 %v4071_v4 }
 0x66a   : > { %v2752_v9 = vadd.f32 %v2751_v17, %v2750_v6  ;;  %v2753_v18 = vpop.f32.mrb[182].mxu0 }
 0x66b   : > { %v2754_v28 = vpop.f32.mrb[183].mxu0 }
 0x66c   : > { %v2755_v19 = vadd.f32 %v2754_v28, %v2753_v18 }
 0x66e   : > { %v1718_v20 = vpack.c.bf16 %v2755_v19, %v2752_v9 }
 0x670   : > { %v2756_v16 = vpop.f32.mrb[184].mxu0  ;;  %1857 = vmatprep.mubr.bf16.mxu1 %v1718_v20 }
 0x671   : > { %v2757_v26 = vpop.f32.mrb[185].mxu0  ;;  %1858 = vmatmul.mubr.bf16.gmra.mrb[180].mxu1 %v4077_v35 }
 0x672   : > { %v2758_v14 = vadd.f32 %v2757_v26, %v2756_v16  ;;  %v2759_v27 = vpop.f32.mrb[186].mxu0 }
 0x673   : > { %v2760_v30 = vpop.f32.mrb[187].mxu0 }
 0x674   : > { %v2761_v36 = vadd.f32 %v2760_v30, %v2759_v27 }
 0x676   : > { %v1719_v31 = vpack.c.bf16 %v2761_v36, %v2758_v14 }
 0x678   : > { %v2762_v8 = vpop.f32.mrb[188].mxu0  ;;  %1865 = vmatprep.mubr.bf16.mxu1 %v1719_v31 }
 0x679   : > { %v2763_v29 = vpop.f32.mrb[189].mxu0  ;;  %1866 = vmatmul.mubr.bf16.gmra.mrb[184].mxu1 %v4083_v43 }
 0x67a   : > { %v2764_v4 = vadd.f32 %v2763_v29, %v2762_v8  ;;  %v2765_v63 = vpop.f32.mrb[190].mxu0 }
 0x67b   : > { %v2766_v33 = vpop.f32.mrb[191].mxu0 }
 0x67c   : > { %v2767_v32 = vadd.f32 %v2766_v33, %v2765_v63 }
 0x67e   : > { %v1720_v42 = vpack.c.bf16 %v2767_v32, %v2764_v4 }
 0x680   : > { %1873 = vmatprep.mubr.bf16.mxu1 %v1720_v42 }
 0x681   : > { %1874 = vmatmul.mubr.bf16.gmra.mrb[188].mxu1 %v4089_v60 }
 0x6dc   : > { %v2784_v1 = vpop.f32.mrb[128].mxu1 }
 0x6dd   : > { %v2785_v35 = vpop.f32.mrb[129].mxu1 }
 0x6de   : > { %v2786_v51 = vadd.f32 %v2785_v35, %v2784_v1  ;;  %v2787_v37 = vpop.f32.mrb[130].mxu1 }
 0x6df   : > { %v2788_v38 = vpop.f32.mrb[131].mxu1 }
 0x6e0   : > { %v1756_v22 = vadd.f32 %v4059_v5, %v2786_v51  ;;  %v2789_v39 = vadd.f32 %v2788_v38, %v2787_v37 }
 0x6e2   : > { %v1759_v59 = vadd.f32 %v4059_v5, %v2789_v39  ;;  %v1882_v43 = vmax.f32 %v1756_v22, 0.0 }
 0x6e4   : > { %v1883_v40 = vmax.f32 %v1759_v59, 0.0  ;;  %v2790_v52 = vpop.f32.mrb[132].mxu1 }
 0x6e5   : > { %v2791_v41 = vpop.f32.mrb[133].mxu1 }
 0x6e6   : > { %v4142_v50 = vpack.c.bf16 %v1883_v40, %v1882_v43  ;;  %v2792_v56 = vadd.f32 %v2791_v41, %v2790_v52  ;;  %v2793_v60 = vpop.f32.mrb[134].mxu1 }
 0x6e7   : > { %v2794_v57 = vpop.f32.mrb[135].mxu1 }
 0x6e8   : > { %v1764_v44 = vadd.f32 %v4059_v5, %v2792_v56  ;;  %v2795_v45 = vadd.f32 %v2794_v57, %v2793_v60 }
 0x6ea   : > { %v1767_v21 = vadd.f32 %v4059_v5, %v2795_v45  ;;  %v1884_v46 = vmax.f32 %v1764_v44, 0.0 }
 0x6ec   : > { %v1885_v58 = vmax.f32 %v1767_v21, 0.0  ;;  %v2796_v62 = vpop.f32.mrb[136].mxu1 }
 0x6ed   : > { %v2797_v25 = vpop.f32.mrb[137].mxu1 }
 0x6ee   : > { %v4146_v12 = vpack.c.bf16 %v1885_v58, %v1884_v46  ;;  %v2798_v11 = vadd.f32 %v2797_v25, %v2796_v62  ;;  %v2799_v10 = vpop.f32.mrb[138].mxu1 }
 0x6ef   : > { %v2800_v48 = vpop.f32.mrb[139].mxu1 }
 0x6f0   : > { %v1772_v53 = vadd.f32 %v4059_v5, %v2798_v11  ;;  %v2801_v2 = vadd.f32 %v2800_v48, %v2799_v10 }
 0x6f2   : > { %v1775_v34 = vadd.f32 %v4059_v5, %v2801_v2  ;;  %v1886_v13 = vmax.f32 %v1772_v53, 0.0 }
 0x6f4   : > { %v1887_v54 = vmax.f32 %v1775_v34, 0.0  ;;  %v2802_v7 = vpop.f32.mrb[140].mxu1 }
 0x6f5   : > { %v2803_v24 = vpop.f32.mrb[141].mxu1 }
 0x6f6   : > { %v4150_v23 = vpack.c.bf16 %v1887_v54, %v1886_v13  ;;  %v2804_v47 = vadd.f32 %v2803_v24, %v2802_v7  ;;  %v2805_v55 = vpop.f32.mrb[142].mxu1 }
 0x6f7   : > { %v2806_v61 = vpop.f32.mrb[143].mxu1 }
 0x6f8   : > { %v1780_v49 = vadd.f32 %v4059_v5, %v2804_v47  ;;  %v2807_v3 = vadd.f32 %v2806_v61, %v2805_v55 }
 0x6fa   : > { %v1783_v15 = vadd.f32 %v4059_v5, %v2807_v3  ;;  %v1888_v6 = vmax.f32 %v1780_v49, 0.0 }
 0x6fc   : > { %v1889_v17 = vmax.f32 %v1783_v15, 0.0  ;;  %v2808_v9 = vpop.f32.mrb[144].mxu1 }
 0x6fd   : > { %v2809_v18 = vpop.f32.mrb[145].mxu1 }
 0x6fe   : > { %v4154_v28 = vpack.c.bf16 %v1889_v17, %v1888_v6  ;;  %v2810_v19 = vadd.f32 %v2809_v18, %v2808_v9  ;;  %v2811_v20 = vpop.f32.mrb[146].mxu1 }
 0x6ff   : > { %v2812_v16 = vpop.f32.mrb[147].mxu1 }
 0x700   : > { %v1788_v26 = vadd.f32 %v4059_v5, %v2810_v19  ;;  %v2813_v14 = vadd.f32 %v2812_v16, %v2811_v20 }
 0x702   : > { %v1791_v27 = vadd.f32 %v4059_v5, %v2813_v14  ;;  %v1890_v30 = vmax.f32 %v1788_v26, 0.0 }
 0x704   : > { %v1891_v36 = vmax.f32 %v1791_v27, 0.0  ;;  %v2814_v31 = vpop.f32.mrb[148].mxu1 }
 0x705   : > { %v2815_v8 = vpop.f32.mrb[149].mxu1 }
 0x706   : > { %v4158_v29 = vpack.c.bf16 %v1891_v36, %v1890_v30  ;;  %v2816_v4 = vadd.f32 %v2815_v8, %v2814_v31  ;;  %v2817_v63 = vpop.f32.mrb[150].mxu1 }
 0x707   : > { %v2818_v33 = vpop.f32.mrb[151].mxu1 }
 0x708   : > { %v1796_v32 = vadd.f32 %v4059_v5, %v2816_v4  ;;  %v2819_v42 = vadd.f32 %v2818_v33, %v2817_v63 }
 0x70a   : > { %v1799_v1 = vadd.f32 %v4059_v5, %v2819_v42  ;;  %v1892_v35 = vmax.f32 %v1796_v32, 0.0 }
 0x70c   : > { %v1893_v51 = vmax.f32 %v1799_v1, 0.0  ;;  %v2820_v37 = vpop.f32.mrb[152].mxu1 }
 0x70d   : > { %v2821_v38 = vpop.f32.mrb[153].mxu1 }
 0x70e   : > { %v4162_v22 = vpack.c.bf16 %v1893_v51, %v1892_v35  ;;  %v2822_v39 = vadd.f32 %v2821_v38, %v2820_v37  ;;  %v2823_v0 = vpop.f32.mrb[154].mxu1 }
 0x70f   : > { %v2824_v59 = vpop.f32.mrb[155].mxu1 }
 0x710   : > { %v1804_v43 = vadd.f32 %v4059_v5, %v2822_v39  ;;  %v2825_v40 = vadd.f32 %v2824_v59, %v2823_v0 }
 0x712   : > { %v1807_v52 = vadd.f32 %v4059_v5, %v2825_v40  ;;  %v1894_v41 = vmax.f32 %v1804_v43, 0.0 }
 0x714   : > { %v1895_v56 = vmax.f32 %v1807_v52, 0.0  ;;  %v2826_v60 = vpop.f32.mrb[156].mxu1 }
 0x715   : > { %v2827_v57 = vpop.f32.mrb[157].mxu1 }
 0x716   : > { %v4166_v44 = vpack.c.bf16 %v1895_v56, %v1894_v41  ;;  %v2828_v45 = vadd.f32 %v2827_v57, %v2826_v60  ;;  %v2829_v21 = vpop.f32.mrb[158].mxu1 }
 0x717   : > { %v2830_v46 = vpop.f32.mrb[159].mxu1 }
 0x718   : > { %v1812_v58 = vadd.f32 %v4059_v5, %v2828_v45  ;;  %v2831_v62 = vadd.f32 %v2830_v46, %v2829_v21 }
 0x71a   : > { %v1815_v25 = vadd.f32 %v4059_v5, %v2831_v62  ;;  %v1896_v11 = vmax.f32 %v1812_v58, 0.0 }
 0x71c   : > { %v1897_v10 = vmax.f32 %v1815_v25, 0.0  ;;  %v2832_v48 = vpop.f32.mrb[160].mxu1 }
 0x71d   : > { %v2833_v53 = vpop.f32.mrb[161].mxu1 }
 0x71e   : > { %v4170_v2 = vpack.c.bf16 %v1897_v10, %v1896_v11  ;;  %v2834_v34 = vadd.f32 %v2833_v53, %v2832_v48  ;;  %v2835_v13 = vpop.f32.mrb[162].mxu1 }
 0x71f   : > { %v2836_v54 = vpop.f32.mrb[163].mxu1 }
 0x720   : > { %v1820_v7 = vadd.f32 %v4059_v5, %v2834_v34  ;;  %v2837_v24 = vadd.f32 %v2836_v54, %v2835_v13 }
 0x722   : > { %v1823_v47 = vadd.f32 %v4059_v5, %v2837_v24  ;;  %v1898_v55 = vmax.f32 %v1820_v7, 0.0 }
 0x724   : > { %v1899_v61 = vmax.f32 %v1823_v47, 0.0  ;;  %v2838_v49 = vpop.f32.mrb[164].mxu1 }
 0x725   : > { %v2839_v3 = vpop.f32.mrb[165].mxu1 }
 0x726   : > { %v2840_v15 = vadd.f32 %v2839_v3, %v2838_v49  ;;  %v2841_v6 = vpop.f32.mrb[166].mxu1  ;;  %v1922_v17 = vpack.c.bf16 %v1899_v61, %v1898_v55 }
 0x727   : > { %v2842_v9 = vpop.f32.mrb[167].mxu1 }
 0x728   : > { %v1828_v18 = vadd.f32 %v4059_v5, %v2840_v15  ;;  %v2843_v19 = vadd.f32 %v2842_v9, %v2841_v6  ;;  %2880 = vmatprep.subr.bf16.mxu0 %v1922_v17 }
 0x729   : > { %2881 = vmatpush3.bf16.msra.mxu0 %v4142_v50 }
 0x72a   : > { %v1831_v20 = vadd.f32 %v4059_v5, %v2843_v19  ;;  %v1900_v16 = vmax.f32 %v1828_v18, 0.0 }
 0x72c   : > { %v1901_v26 = vmax.f32 %v1831_v20, 0.0  ;;  %v2844_v14 = vpop.f32.mrb[168].mxu1 }
 0x72d   : > { %v2845_v27 = vpop.f32.mrb[169].mxu1 }
 0x72e   : > { %v2846_v30 = vadd.f32 %v2845_v27, %v2844_v14  ;;  %v2847_v36 = vpop.f32.mrb[170].mxu1  ;;  %v1923_v31 = vpack.c.bf16 %v1901_v26, %v1900_v16 }
 0x72f   : > { %v2848_v8 = vpop.f32.mrb[171].mxu1 }
 0x730   : > { %v1836_v4 = vadd.f32 %v4059_v5, %v2846_v30  ;;  %v2849_v63 = vadd.f32 %v2848_v8, %v2847_v36  ;;  %2882 = vmatprep.subr.bf16.mxu0 %v1923_v31 }
 0x731   : > { %2883 = vmatpush3.bf16.msra.mxu0 %v4146_v12 }
 0x732   : > { %v1839_v33 = vadd.f32 %v4059_v5, %v2849_v63  ;;  %v1902_v32 = vmax.f32 %v1836_v4, 0.0  ;;  %v3060_v4 = vld [vmem:[#allocation7] ss:$8 sps:$4 sm:$0xff]  }
 0x734   : > { %v1903_v50 = vmax.f32 %v1839_v33, 0.0  ;;  %v2850_v42 = vpop.f32.mrb[172].mxu1 }
 0x735   : > { %v2851_v1 = vpop.f32.mrb[173].mxu1 }
 0x736   : > { %v2852_v35 = vadd.f32 %v2851_v1, %v2850_v42  ;;  %v2853_v51 = vpop.f32.mrb[174].mxu1  ;;  %v1924_v37 = vpack.c.bf16 %v1903_v50, %v1902_v32 }
 0x737   : > { %v2854_v38 = vpop.f32.mrb[175].mxu1 }
 0x738   : > { %v1844_v39 = vadd.f32 %v4059_v5, %v2852_v35  ;;  %v2855_v0 = vadd.f32 %v2854_v38, %v2853_v51  ;;  %2884 = vmatprep.subr.bf16.mxu0 %v1924_v37 }
 0x739   : > { %2885 = vmatpush3.bf16.msra.mxu0 %v4150_v23 }
 0x73a   : > { %v1847_v59 = vadd.f32 %v4059_v5, %v2855_v0  ;;  %v1904_v43 = vmax.f32 %v1844_v39, 0.0 }
 0x73c   : > { %v1905_v12 = vmax.f32 %v1847_v59, 0.0  ;;  %v2856_v40 = vpop.f32.mrb[176].mxu1 }
 0x73d   : > { %v2857_v52 = vpop.f32.mrb[177].mxu1 }
 0x73e   : > { %v2858_v41 = vadd.f32 %v2857_v52, %v2856_v40  ;;  %v2859_v56 = vpop.f32.mrb[178].mxu1  ;;  %v1925_v60 = vpack.c.bf16 %v1905_v12, %v1904_v43 }
 0x73f   : > { %v2860_v57 = vpop.f32.mrb[179].mxu1 }
 0x740   : > { %v1852_v45 = vadd.f32 %v4059_v5, %v2858_v41  ;;  %v2861_v21 = vadd.f32 %v2860_v57, %v2859_v56  ;;  %2886 = vmatprep.subr.bf16.mxu0 %v1925_v60 }
 0x741   : > { %2887 = vmatpush3.bf16.msra.mxu0 %v4154_v28 }
 0x742   : > { %v1855_v46 = vadd.f32 %v4059_v5, %v2861_v21  ;;  %v1906_v58 = vmax.f32 %v1852_v45, 0.0 }
 0x744   : > { %v1907_v23 = vmax.f32 %v1855_v46, 0.0  ;;  %v2862_v62 = vpop.f32.mrb[180].mxu1 }
 0x745   : > { %v2863_v25 = vpop.f32.mrb[181].mxu1 }
 0x746   : > { %v2864_v11 = vadd.f32 %v2863_v25, %v2862_v62  ;;  %v2865_v10 = vpop.f32.mrb[182].mxu1  ;;  %v1926_v48 = vpack.c.bf16 %v1907_v23, %v1906_v58 }
 0x747   : > { %v2866_v53 = vpop.f32.mrb[183].mxu1 }
 0x748   : > { %v1860_v34 = vadd.f32 %v4059_v5, %v2864_v11  ;;  %v2867_v13 = vadd.f32 %v2866_v53, %v2865_v10  ;;  %2888 = vmatprep.subr.bf16.mxu0 %v1926_v48 }
 0x749   : > { %2889 = vmatpush3.bf16.msra.mxu0 %v4158_v29 }
 0x74a   : > { %v1863_v54 = vadd.f32 %v4059_v5, %v2867_v13  ;;  %v1908_v7 = vmax.f32 %v1860_v34, 0.0 }
 0x74c   : > { %v1909_v28 = vmax.f32 %v1863_v54, 0.0  ;;  %v2868_v24 = vpop.f32.mrb[184].mxu1 }
 0x74d   : > { %v2869_v47 = vpop.f32.mrb[185].mxu1 }
 0x74e   : > { %v2870_v55 = vadd.f32 %v2869_v47, %v2868_v24  ;;  %v2871_v61 = vpop.f32.mrb[186].mxu1  ;;  %v1927_v49 = vpack.c.bf16 %v1909_v28, %v1908_v7 }
 0x74f   : > { %v2872_v3 = vpop.f32.mrb[187].mxu1 }
 0x750   : > { %v1868_v15 = vadd.f32 %v4059_v5, %v2870_v55  ;;  %v2873_v6 = vadd.f32 %v2872_v3, %v2871_v61  ;;  %2890 = vmatprep.subr.bf16.mxu0 %v1927_v49 }
 0x751   : > { %2891 = vmatpush3.bf16.msra.mxu0 %v4162_v22 }
 0x752   : > { %v1871_v17 = vadd.f32 %v4059_v5, %v2873_v6  ;;  %v1910_v9 = vmax.f32 %v1868_v15, 0.0 }
 0x754   : > { %v1911_v29 = vmax.f32 %v1871_v17, 0.0  ;;  %v2874_v18 = vpop.f32.mrb[188].mxu1 }
 0x755   : > { %v2875_v19 = vpop.f32.mrb[189].mxu1 }
 0x756   : > { %v2876_v20 = vadd.f32 %v2875_v19, %v2874_v18  ;;  %v2877_v16 = vpop.f32.mrb[190].mxu1  ;;  %v1928_v26 = vpack.c.bf16 %v1911_v29, %v1910_v9 }
 0x757   : > { %v2878_v14 = vpop.f32.mrb[191].mxu1 }
 0x758   : > { %v1876_v27 = vadd.f32 %v4059_v5, %v2876_v20  ;;  %v2879_v30 = vadd.f32 %v2878_v14, %v2877_v16  ;;  %2892 = vmatprep.subr.bf16.mxu0 %v1928_v26 }
 0x759   : > { %2893 = vmatpush3.bf16.msra.mxu0 %v4166_v44 }
 0x75a   : > { %v1879_v22 = vadd.f32 %v4059_v5, %v2879_v30  ;;  %v1912_v36 = vmax.f32 %v1876_v27, 0.0 }
 0x75c   : > { %v1913_v31 = vmax.f32 %v1879_v22, 0.0 }
 0x75e   : > { %v1929_v8 = vpack.c.bf16 %v1913_v31, %v1912_v36 }
 0x760   : > { %2894 = vmatprep.subr.bf16.mxu0 %v1929_v8 }
 0x761   : > { %2895 = vmatpush3.bf16.msra.mxu0 %v4170_v2 }
 0x764   : > { %1975 = vmatmul.mubr.bf16.vlgmr.msra.gmra.mrb[192].mxu0 %v3060_v4 }
 0x837   : > { %v2896_v63 = vpop.f32.mrb[192].mxu0 }
 0x838   : > { %v2897_v33 = vpop.f32.mrb[193].mxu0 }
 0x839   : > { %v2898_v32 = vadd.f32 %v2897_v33, %v2896_v63  ;;  %v2899_v5 = vpop.f32.mrb[194].mxu0 }
 0x83a   : > { %v2900_v44 = vpop.f32.mrb[195].mxu0 }
 0x83b   : > { %1983 = vst [vmem:[%s312_s0] sm:$0xff] %v2898_v32  ;;  %v2901_v2 = vadd.f32 %v2900_v44, %v2899_v5 }
 0x83d   : > { %1984 = vst [vmem:[%s312_s0 + $0x8] sm:$0xff] %v2901_v2 }
 0x83e   : > { %3228 = shalt.err (!%p3225_p5)
}
 0x83f   : > { %s3229_s26 = scalar_lea.hbm %s4203_s14, 256  ;;  %s3233_s24 = scalar_lea.hbm %s4252_s5, 512 }
 0x840   : > { %p3230_p9 = scmp.ne.s32.totalorder %s4203_s14, %s3229_s26  ;;  %p3234_p11 = scmp.lt.u32.totalorder %s4203_s14, %s4252_s5 }
 0x841   : > { %p3235_p2 = scmp.lt.u32.totalorder %s3233_s24, %s3229_s26  ;;  %p3237_p1 = scmp.lt.u32.totalorder %s3229_s26, %s4203_s14 }
 0x842   : > { %p3231_p0 = pnand %p3230_p9, %p4320_p13 }
 0x843   : > { %p3236_p12 = por %p3235_p2, %p3234_p11 }
 0x844   : > { %p3232_p8 = pneg %p3231_p0 }
 0x845   : > { %p3238_p6 = por %p3237_p1, %p3236_p12 }
 0x847   : > { %p3239_p10 = pnand %p3238_p6, %p3232_p8 }
 0x849   : > { %3242 = shalt.err (!%p3239_p10)
}
 0x84a   : > { %s3304_s28 = smov 128   ;;  %s3305_s17 = smov 8  }
 0x84b   : > { %2914 = dma.vmem_to_hbm [thread:$0]  (%p4320_p13), %s4198_s12, 256, %s4203_s14, %s1986_s9, %s3304_s28, %s3304_s28, %s3305_s17  }
 0x84c PF: > { %s2014_s0 = sand.u32 1, %s3281_s18   ;;  %p4321_p4 = scmp.ne.s32.totalorder %s4276_s25, 0 }
 0x84d   : > { %p4322_p7 = scmp.ge.s32.totalorder %s3293_s21, 2  ;;  %s2015_s10 = scalar_lea.sflag [#allocation4], %s2014_s0 }
 0x84f   : > { %p2931_p3 = pnand %p4322_p7, %p4321_p4 }
 0x851   : > { %3276 = dma.done.wait (!%p2931_p3), %s2015_s10, 256  }
 0x852   : > { %3278 = vsyncadd (!%p2931_p3), %s2015_s10, 4294967040  ;;  %p22_p5 = scmp.ge.s32.totalorder %s3452_s23, 4   ;;  %s4323_s18 = smov %s3285_s19 }
 0x853   : > { %s4324_s19 = smov %s3289_s20  ;;  %s4325_s20 = smov %s3461_s7 }
 0x854   : > { %s4326_s21 = smov %s3452_s23  ;;  %24 = sbr.rel (!%p22_p5) target bundleno = 12 (0xc), region = 106 }
 0x85b   :  { %2020 = vsyncpa [#allocation3], 1 }
 0x85c   :  { %2022 = vsyncpa [#allocation3 + $0x1], 1 }
 0x85d   :  { %2023 = vsyncpa [#allocation6], 1 }
 0x85e   :  { %2025 = vsyncpa [#allocation6 + $0x1], 1 }
 0x85f   :  { %2026 = vsyncpa [#allocation9], 1 }
 0x860   :  { %2027 = vsyncpa [#allocation4], 1 }
 0x861   :  { %2029 = vsyncpa [#allocation4 + $0x1], 1 }

</bundles_post_ra>
